<compile_context>
chip_gen: v5e
topology: v5e:2x2
jax: 0.10.0
libtpu: 0.0.40
codegen_flags: <defaults>
</compile_context>

<pallas_src>
import jax
import jax.numpy as jnp
from jax.experimental import pallas as pl
from jax.experimental.pallas import tpu as pltpu

_LANE = 128


# ---------------------------------------------------------------------------
# Kernels
# ---------------------------------------------------------------------------
def _tagconv_relu_kernel(a_ref, dinv_row_ref, dinv_col_ref, h_row_ref, h_col_ref,
                         w0_ref, w1_ref, b_ref, out_ref, acc_ref):
    """One TAGConv(k=1) layer + ReLU. Grid = (row tiles, reduction tiles)."""
    k = pl.program_id(1)

    @pl.when(k == 0)
    def _init():
        acc_ref[...] = jnp.zeros_like(acc_ref)

    # acc += A[i-tile, k-tile] @ (dinv[k-tile] * H[k-tile, :])
    # A is the exact 0/1 adjacency in bf16; the D^{-1/2} factors stay in f32 until the
    # bf16 MXU feed (better accuracy than streaming a bf16-rounded Ahat).
    h_col = (h_col_ref[...].astype(jnp.float32) * dinv_col_ref[...]).astype(jnp.bfloat16)
    acc_ref[...] += jnp.dot(a_ref[...], h_col, preferred_element_type=jnp.float32)

    @pl.when(k == pl.num_programs(1) - 1)
    def _finalize():
        agg = (acc_ref[...] * dinv_row_ref[...]).astype(jnp.bfloat16)
        h = (jnp.dot(h_row_ref[...], w0_ref[...], preferred_element_type=jnp.float32)
             + jnp.dot(agg, w1_ref[...], preferred_element_type=jnp.float32)
             + b_ref[...])
        out_ref[...] = jnp.maximum(h, 0.0).astype(out_ref.dtype)


def _tagconv_relu_mlp_kernel(a_ref, dinv_row_ref, dinv_col_ref, h_row_ref, h_col_ref,
                             w0_ref, w1_ref, b_ref, wm1_ref, bm1_ref, wm2_ref, bm2_ref,
                             out_ref, acc_ref):
    """Second TAGConv(k=1) + ReLU + 2-layer MLP (sigmoid/sigmoid), fused."""
    k = pl.program_id(1)

    @pl.when(k == 0)
    def _init():
        acc_ref[...] = jnp.zeros_like(acc_ref)

    h_col = (h_col_ref[...].astype(jnp.float32) * dinv_col_ref[...]).astype(jnp.bfloat16)
    acc_ref[...] += jnp.dot(a_ref[...], h_col, preferred_element_type=jnp.float32)

    @pl.when(k == pl.num_programs(1) - 1)
    def _finalize():
        agg = (acc_ref[...] * dinv_row_ref[...]).astype(jnp.bfloat16)
        h = (jnp.dot(h_row_ref[...], w0_ref[...], preferred_element_type=jnp.float32)
             + jnp.dot(agg, w1_ref[...], preferred_element_type=jnp.float32)
             + b_ref[...])
        h = jnp.maximum(h, 0.0).astype(jnp.bfloat16)
        # dropout(0.5, training=False) -> identity
        z = jnp.dot(h, wm1_ref[...], preferred_element_type=jnp.float32) + bm1_ref[...]
        z = jax.nn.sigmoid(z).astype(jnp.bfloat16)
        z = jnp.dot(z, wm2_ref[...], preferred_element_type=jnp.float32) + bm2_ref[...]
        out_ref[...] = jax.nn.sigmoid(z).astype(out_ref.dtype)


def _tag_fused_kernel(a_ref, dinv_ref, x_ref, w01_ref, w11_ref, b1_ref,
                      w02_ref, w12_ref, b2_ref, wm1_ref, bm1_ref, wm2_ref, bm2_ref,
                      out_ref):
    """Fully-VMEM-resident fast path: both TAGConv layers + ReLU + MLP in one call.

    Adjacency is read from HBM exactly once and H1 never round-trips through HBM.
    """
    a = a_ref[...]            # (n, n) bf16 exact 0/1 adjacency
    dinv = dinv_ref[...]      # (n, 1) f32

    def tagconv_relu(h_bf16, w0, w1, b):
        hs = (h_bf16.astype(jnp.float32) * dinv).astype(jnp.bfloat16)
        agg = jnp.dot(a, hs, preferred_element_type=jnp.float32) * dinv
        h = (jnp.dot(h_bf16, w0, preferred_element_type=jnp.float32)
             + jnp.dot(agg.astype(jnp.bfloat16), w1, preferred_element_type=jnp.float32)
             + b)
        return jnp.maximum(h, 0.0).astype(jnp.bfloat16)

    h1 = tagconv_relu(x_ref[...], w01_ref[...], w11_ref[...], b1_ref[...])
    h2 = tagconv_relu(h1, w02_ref[...], w12_ref[...], b2_ref[...])
    z = jnp.dot(h2, wm1_ref[...], preferred_element_type=jnp.float32) + bm1_ref[...]
    z = jax.nn.sigmoid(z).astype(jnp.bfloat16)
    z = jnp.dot(z, wm2_ref[...], preferred_element_type=jnp.float32) + bm2_ref[...]
    out_ref[...] = jax.nn.sigmoid(z).astype(out_ref.dtype)


# ---------------------------------------------------------------------------
# Wrapper / glue
# ---------------------------------------------------------------------------
def _round_up(x, m):
    return ((x + m - 1) // m) * m


def _pad2d(a, rows, cols, dtype):
    out = jnp.zeros((rows, cols), dtype)
    return out.at[:a.shape[0], :a.shape[1]].set(a.astype(dtype))


def _vmem_limit_bytes():
    """Scoped VMEM limit derived from hardware capacity with headroom.

    v5e/v6e (128 MiB physical) -> 96 MiB; v7x (64 MiB physical) -> 48 MiB.
    """
    cap = 64 * 1024 * 1024  # conservative default (v7x per-TC physical VMEM)
    try:
        info = pltpu.get_tpu_info()
        cap_q = getattr(info, "vmem_capacity_bytes", None)
        if cap_q:
            cap = int(cap_q)
    except Exception:
        pass
    return min(int(cap * 3 // 4), 96 * 1024 * 1024)


def _fused_path_fits(n_pad, f_in, f_hid, f_out, f_mh, f_od, vmem_limit):
    """Can adjacency + activations + weights all live in VMEM for one fused call?"""
    f_max = max(f_in, f_hid, f_out, f_mh, f_od)
    a_bytes = n_pad * n_pad * 2
    act_bytes = n_pad * (2 * f_in + 4 + 4 * f_od) + 5 * n_pad * f_max * 4
    w_bytes = (2 * (f_in * f_hid + f_hid * f_out + f_out * f_mh + f_mh * f_od)
               + 4 * (f_hid + f_out + f_mh + f_od))
    return a_bytes + act_bytes + w_bytes + (2 << 20) <= int(vmem_limit * 7 // 10)


def _select_tile(n, f_feat, w_bytes, vmem_limit):
    """Pick the square tile for the tiled path.

    Scores each candidate by streamed bytes (n_pad^2) over the measured HBM-roofline
    fraction for that tile size, with a penalty when only one row tile exists (would
    prevent sharding the 'parallel' axis across v7x's two TensorCores).
    """
    budget = int(vmem_limit * 7 // 10)
    eff = {128: 0.29, 256: 0.63, 512: 0.85, 1024: 0.86, 2048: 0.87}
    best_t, best_cost = 128, None
    for t in (128, 256, 512, 1024, 2048):
        # double-buffered bf16 A tile + db bf16 row/col activations + f32 acc + db out
        fp = 4 * t * t + 8 * t * f_feat * 2 + 4 * t * f_feat + 8 * t * f_feat + w_bytes
        if t > 128 and fp > budget:
            continue
        n_pad = _round_up(max(n, 1), t)
        cost = (n_pad * n_pad) / eff[t]
        if n_pad // t < 2:
            cost *= 1.5
        if best_cost is None or cost < best_cost:
            best_t, best_cost = t, cost
    return best_t


def tag_forward(adj, x, params, *, force_tiled=False):
    """adj: [N, N] dense adjacency (adj[i, j] = 1 if edge j->i), x: [N, in_feats]."""
    (w0_1, w1_1, b1, w0_2, w1_2, b2, wm1, bm1, wm2, bm2) = params
    n = adj.shape[0]
    in_feats = x.shape[1]
    hid_feats = w0_1.shape[1]
    out_feats = w0_2.shape[1]
    mlp_hidden = wm1.shape[1]
    output_dim = wm2.shape[1]
    assert wm1.shape[0] == out_feats, "MLP input_dim must equal out_feats"

    # TAGConv normalization vector (in-degrees clamped >= 1). D^{-1/2} is folded into the
    # kernels, so the N x N operand streamed from HBM is the exact 0/1 adjacency in bf16.
    deg = jnp.maximum(jnp.sum(adj.astype(jnp.float32), axis=-1), 1.0)
    dinv = jax.lax.rsqrt(deg)

    # Lane-dense padding (multiples of 128) for all feature dims; zero padding is exact.
    f_in = _round_up(in_feats, _LANE)
    f_hid = _round_up(hid_feats, _LANE)
    f_out = _round_up(out_feats, _LANE)
    f_mh = _round_up(mlp_hidden, _LANE)
    f_od = _round_up(output_dim, _LANE)

    vmem_limit = _vmem_limit_bytes()
    # bf16 weights (full-rate MXU, half the DMA); x2 for double-buffering estimate.
    w_bytes = 2 * 2 * (f_in * f_hid * 2 + f_hid * f_out * 2 + f_out * f_mh + f_mh * f_od)
    f_feat = max(f_in, f_hid)
    n128 = _round_up(n, _LANE)

    use_fused = (not force_tiled) and _fused_path_fits(
        n128, f_in, f_hid, f_out, f_mh, f_od, vmem_limit)

    if use_fused:
        n_pad = n128
        tile = None
    else:
        tile = _select_tile(n, f_feat, w_bytes, vmem_limit)
        n_pad = _round_up(n, tile)

    # Padded operands: adjacency exact in bf16, dinv in f32, activations bf16,
    # weights bf16, biases f32.
    a_p = _pad2d(adj, n_pad, n_pad, jnp.bfloat16)
    dinv_p = _pad2d(dinv[:, None], n_pad, 1, jnp.float32)
    x_p = _pad2d(x, n_pad, f_in, jnp.bfloat16)
    w0_1p = _pad2d(w0_1, f_in, f_hid, jnp.bfloat16)
    w1_1p = _pad2d(w1_1, f_in, f_hid, jnp.bfloat16)
    b1p = _pad2d(b1, 1, f_hid, jnp.float32)
    w0_2p = _pad2d(w0_2, f_hid, f_out, jnp.bfloat16)
    w1_2p = _pad2d(w1_2, f_hid, f_out, jnp.bfloat16)
    b2p = _pad2d(b2, 1, f_out, jnp.float32)
    wm1p = _pad2d(wm1, f_out, f_mh, jnp.bfloat16)
    bm1p = _pad2d(bm1, 1, f_mh, jnp.float32)
    wm2p = _pad2d(wm2, f_mh, f_od, jnp.bfloat16)
    bm2p = _pad2d(bm2, 1, f_od, jnp.float32)

    if use_fused:
        cost = pl.CostEstimate(
            flops=(2 * n_pad * n_pad * (f_in + f_hid)
                   + 4 * n_pad * f_in * f_hid + 4 * n_pad * f_hid * f_out
                   + 2 * n_pad * f_out * f_mh + 2 * n_pad * f_mh * f_od),
            transcendentals=n_pad * (f_mh + f_od),
            bytes_accessed=(n_pad * n_pad * 2 + n_pad * (f_in * 2 + 4 + f_od * 4)
                            + w_bytes // 2),
        )
        out_p = pl.pallas_call(
            _tag_fused_kernel,
            out_shape=jax.ShapeDtypeStruct((n_pad, f_od), jnp.float32),
            compiler_params=pltpu.CompilerParams(vmem_limit_bytes=vmem_limit),
            cost_estimate=cost,
        )(a_p, dinv_p, x_p, w0_1p, w1_1p, b1p, w0_2p, w1_2p, b2p,
          wm1p, bm1p, wm2p, bm2p)
        return out_p[:n, :output_dim]

    # ---- Tiled two-pass path (layer-2 aggregation needs the complete H1) --------------
    tm = tk = tile
    grid = (n_pad // tm, n_pad // tk)
    n_row_tiles = grid[0]
    cparams = pltpu.CompilerParams(
        dimension_semantics=("parallel", "arbitrary"),
        vmem_limit_bytes=vmem_limit,
    )

    # ---- Pass 1: H1 = relu(TAGConv1(A, dinv, X)) ---------------------------------------
    cost1 = pl.CostEstimate(
        flops=2 * n_pad * n_pad * f_in + 4 * n_pad * f_in * f_hid,
        transcendentals=0,
        bytes_accessed=(n_pad * n_pad * 2                     # A (bf16), read once
                        + n_row_tiles * n_pad * f_in * 2      # X cols, re-streamed / row tile
                        + n_pad * f_in * 2                    # X rows (self term)
                        + (n_row_tiles + 1) * n_pad * 4       # dinv streams (f32)
                        + 2 * f_in * f_hid * 2 + f_hid * 4    # weights (bf16) + bias (f32)
                        + n_pad * f_hid * 2),                 # H1 output (bf16)
    )
    h1_p = pl.pallas_call(
        _tagconv_relu_kernel,
        out_shape=jax.ShapeDtypeStruct((n_pad, f_hid), jnp.bfloat16),
        grid_spec=pltpu.PrefetchScalarGridSpec(
            num_scalar_prefetch=0,
            grid=grid,
            in_specs=[
                pl.BlockSpec((tm, tk), lambda i, k: (i, k)),       # A tile
                pl.BlockSpec((tm, 1), lambda i, k: (i, 0)),        # dinv (row side)
                pl.BlockSpec((tk, 1), lambda i, k: (k, 0)),        # dinv (col side)
                pl.BlockSpec((tm, f_in), lambda i, k: (i, 0)),     # X rows (self term)
                pl.BlockSpec((tk, f_in), lambda i, k: (k, 0)),     # X rows (aggregation)
                pl.BlockSpec((f_in, f_hid), lambda i, k: (0, 0)),  # W_self (bf16)
                pl.BlockSpec((f_in, f_hid), lambda i, k: (0, 0)),  # W_hop (bf16)
                pl.BlockSpec((1, f_hid), lambda i, k: (0, 0)),     # bias (f32)
            ],
            out_specs=pl.BlockSpec((tm, f_hid), lambda i, k: (i, 0)),
            scratch_shapes=[pltpu.VMEM((tm, f_in), jnp.float32)],
        ),
        compiler_params=cparams,
        cost_estimate=cost1,
    )(a_p, dinv_p, dinv_p, x_p, x_p, w0_1p, w1_1p, b1p)

    # ---- Pass 2: out = MLP(relu(TAGConv2(A, dinv, H1))) --------------------------------
    cost2 = pl.CostEstimate(
        flops=(2 * n_pad * n_pad * f_hid + 4 * n_pad * f_hid * f_out
               + 2 * n_pad * f_out * f_mh + 2 * n_pad * f_mh * f_od),
        transcendentals=n_pad * (f_mh + f_od),
        bytes_accessed=(n_pad * n_pad * 2
                        + n_row_tiles * n_pad * f_hid * 2
                        + n_pad * f_hid * 2
                        + (n_row_tiles + 1) * n_pad * 4
                        + (2 * f_hid * f_out + f_out * f_mh + f_mh * f_od) * 2
                        + (f_out + f_mh + f_od) * 4
                        + n_pad * f_od * 4),
    )
    out_p = pl.pallas_call(
        _tagconv_relu_mlp_kernel,
        out_shape=jax.ShapeDtypeStruct((n_pad, f_od), jnp.float32),
        grid_spec=pltpu.PrefetchScalarGridSpec(
            num_scalar_prefetch=0,
            grid=grid,
            in_specs=[
                pl.BlockSpec((tm, tk), lambda i, k: (i, k)),        # A tile
                pl.BlockSpec((tm, 1), lambda i, k: (i, 0)),         # dinv (row side)
                pl.BlockSpec((tk, 1), lambda i, k: (k, 0)),         # dinv (col side)
                pl.BlockSpec((tm, f_hid), lambda i, k: (i, 0)),     # H1 rows (self term)
                pl.BlockSpec((tk, f_hid), lambda i, k: (k, 0)),     # H1 rows (aggregation)
                pl.BlockSpec((f_hid, f_out), lambda i, k: (0, 0)),  # W_self
                pl.BlockSpec((f_hid, f_out), lambda i, k: (0, 0)),  # W_hop
                pl.BlockSpec((1, f_out), lambda i, k: (0, 0)),      # bias
                pl.BlockSpec((f_out, f_mh), lambda i, k: (0, 0)),   # MLP W1
                pl.BlockSpec((1, f_mh), lambda i, k: (0, 0)),       # MLP b1
                pl.BlockSpec((f_mh, f_od), lambda i, k: (0, 0)),    # MLP W2
                pl.BlockSpec((1, f_od), lambda i, k: (0, 0)),       # MLP b2
            ],
            out_specs=pl.BlockSpec((tm, f_od), lambda i, k: (i, 0)),
            scratch_shapes=[pltpu.VMEM((tm, f_hid), jnp.float32)],
        ),
        compiler_params=cparams,
        cost_estimate=cost2,
    )(a_p, dinv_p, dinv_p, h1_p, h1_p, w0_2p, w1_2p, b2p, wm1p, bm1p, wm2p, bm2p)

    return out_p[:n, :output_dim]


# ---------------------------------------------------------------------------
# Parameters / reference
# ---------------------------------------------------------------------------
def make_params(key, in_feats, hid_feats, out_feats, input_dim, hidden_dim, output_dim):
    ks = jax.random.split(key, 8)

    def glorot(k, shape):
        fan_in, fan_out = shape
        lim = (6.0 / (fan_in + fan_out)) ** 0.5
        return jax.random.uniform(k, shape, jnp.float32, -lim, lim)

    # TAGConv(k=1): Linear(2*in, out) split into self-hop (W0) and 1-hop (W1) blocks.
    w0_1 = glorot(ks[0], (in_feats, hid_feats))
    w1_1 = glorot(ks[1], (in_feats, hid_feats))
    b1 = jnp.zeros((1, hid_feats), jnp.float32)
    w0_2 = glorot(ks[2], (hid_feats, out_feats))
    w1_2 = glorot(ks[3], (hid_feats, out_feats))
    b2 = jnp.zeros((1, out_feats), jnp.float32)
    # TODO(synk): mlp.MLP internals assumed (Linear -> sigmoid -> Linear -> sigmoid).
    wm1 = glorot(ks[4], (input_dim, hidden_dim))
    bm1 = 0.01 * jax.random.normal(ks[5], (1, hidden_dim), jnp.float32)
    wm2 = glorot(ks[6], (hidden_dim, output_dim))
    bm2 = 0.01 * jax.random.normal(ks[7], (1, output_dim), jnp.float32)
    return (w0_1, w1_1, b1, w0_2, w1_2, b2, wm1, bm1, wm2, bm2)


def tag_reference(adj, x, params):
    """Plain-JAX f32 reference of the same forward."""
    (w0_1, w1_1, b1, w0_2, w1_2, b2, wm1, bm1, wm2, bm2) = params
    deg = jnp.maximum(jnp.sum(adj, axis=-1), 1.0)
    dinv = jax.lax.rsqrt(deg)
    ahat = dinv[:, None] * adj * dinv[None, :]
    h = jnp.maximum(x @ w0_1 + (ahat @ x) @ w1_1 + b1, 0.0)
    h = jnp.maximum(h @ w0_2 + (ahat @ h) @ w1_2 + b2, 0.0)
    h = jax.nn.sigmoid(h @ wm1 + bm1)
    h = jax.nn.sigmoid(h @ wm2 + bm2)
    return h


# ---------------------------------------------------------------------------
if __name__ == "__main__":
    # Small forward-consistent shapes:
    #   N = 8 nodes, in_feats=4, hid_feats=16, out_feats=16
    #   MLP: num_layers=2, input_dim=out_feats=16, hidden_dim=32, output_dim=8
    N = 8
    in_feats, hid_feats, out_feats = 4, 16, 16
    input_dim, hidden_dim, output_dim = 16, 32, 8

    key = jax.random.PRNGKey(0)
    kx, kp, ka2, kx2 = jax.random.split(key, 4)

    # Deterministic undirected graph: ring (degree >= 2 everywhere) + two chords.
    adj = jnp.zeros((N, N), jnp.float32)
    idx = jnp.arange(N)
    adj = adj.at[idx, (idx + 1) % N].set(1.0)
    adj = adj.at[(idx + 1) % N, idx].set(1.0)
    adj = adj.at[0, 4].set(1.0).at[4, 0].set(1.0)
    adj = adj.at[2, 6].set(1.0).at[6, 2].set(1.0)

    x = jax.random.normal(kx, (N, in_feats), jnp.float32)
    params = make_params(kp, in_feats, hid_feats, out_feats,
                         input_dim, hidden_dim, output_dim)
    ref = tag_reference(adj, x, params)

    # 1) Fused fully-VMEM-resident path (small graph).
    out = jax.block_until_ready(tag_forward(adj, x, params))
    assert out.shape == (N, output_dim)
    assert bool(jnp.all(jnp.isfinite(out)))
    assert bool(jnp.allclose(out, ref, atol=5e-2, rtol=5e-2)), "fused path mismatch"

    # 2) Tiled two-pass path on a larger random graph (exercises the grid / accumulator).
    N2 = 300
    a_rand = jax.random.bernoulli(ka2, 0.05, (N2, N2)).astype(jnp.float32)
    adj2 = jnp.maximum(a_rand, a_rand.T) * (1.0 - jnp.eye(N2, dtype=jnp.float32))
    x2 = jax.random.normal(kx2, (N2, in_feats), jnp.float32)
    out2 = jax.block_until_ready(tag_forward(adj2, x2, params, force_tiled=True))
    ref2 = tag_reference(adj2, x2, params)
    assert out2.shape == (N2, output_dim)
    assert bool(jnp.all(jnp.isfinite(out2)))
    assert bool(jnp.allclose(out2, ref2, atol=5e-2, rtol=5e-2)), "tiled path mismatch"

    print("KERNEL_OK")
</pallas_src>

<mosaic_0001>
module attributes {stable_mosaic.version = 11 : i64} {
  func.func @_tag_fused_kernel(%arg0: memref<128x128xbf16, #tpu.memory_space<vmem>>, %arg1: memref<128x1xf32, #tpu.memory_space<vmem>>, %arg2: memref<128x128xbf16, #tpu.memory_space<vmem>>, %arg3: memref<128x128xbf16, #tpu.memory_space<vmem>>, %arg4: memref<128x128xbf16, #tpu.memory_space<vmem>>, %arg5: memref<1x128xf32, #tpu.memory_space<vmem>>, %arg6: memref<128x128xbf16, #tpu.memory_space<vmem>>, %arg7: memref<128x128xbf16, #tpu.memory_space<vmem>>, %arg8: memref<1x128xf32, #tpu.memory_space<vmem>>, %arg9: memref<128x128xbf16, #tpu.memory_space<vmem>>, %arg10: memref<1x128xf32, #tpu.memory_space<vmem>>, %arg11: memref<128x128xbf16, #tpu.memory_space<vmem>>, %arg12: memref<1x128xf32, #tpu.memory_space<vmem>>, %arg13: memref<128x128xf32, #tpu.memory_space<vmem>>) attributes {dimension_semantics = [], scalar_prefetch = 0 : i64, scratch_operands = 0 : i64, tpu.core_type = #tpu.core_type<tc>} {
    %c0 = arith.constant 0 : index
    %c0_0 = arith.constant 0 : index
    %0 = vector.load %arg0[%c0, %c0_0] : memref<128x128xbf16, #tpu.memory_space<vmem>>, vector<128x128xbf16>
    %c0_1 = arith.constant 0 : index
    %c0_2 = arith.constant 0 : index
    %1 = vector.load %arg1[%c0_1, %c0_2] : memref<128x1xf32, #tpu.memory_space<vmem>>, vector<128x1xf32>
    %c0_3 = arith.constant 0 : index
    %c0_4 = arith.constant 0 : index
    %2 = vector.load %arg2[%c0_3, %c0_4] : memref<128x128xbf16, #tpu.memory_space<vmem>>, vector<128x128xbf16>
    %c0_5 = arith.constant 0 : index
    %c0_6 = arith.constant 0 : index
    %3 = vector.load %arg3[%c0_5, %c0_6] : memref<128x128xbf16, #tpu.memory_space<vmem>>, vector<128x128xbf16>
    %c0_7 = arith.constant 0 : index
    %c0_8 = arith.constant 0 : index
    %4 = vector.load %arg4[%c0_7, %c0_8] : memref<128x128xbf16, #tpu.memory_space<vmem>>, vector<128x128xbf16>
    %c0_9 = arith.constant 0 : index
    %c0_10 = arith.constant 0 : index
    %5 = vector.load %arg5[%c0_9, %c0_10] : memref<1x128xf32, #tpu.memory_space<vmem>>, vector<1x128xf32>
    %6 = arith.extf %2 : vector<128x128xbf16> to vector<128x128xf32>
    %7 = vector.broadcast %1 : vector<128x1xf32> to vector<128x128xf32>
    %8 = arith.mulf %6, %7 : vector<128x128xf32>
    %9 = arith.truncf %8 : vector<128x128xf32> to vector<128x128xbf16>
    %cst = arith.constant dense<0.000000e+00> : vector<128x128xf32>
    %10 = tpu.matmul %0, %9, %cst {dimension_numbers = #tpu.dot_dimension_numbers<[1], [0], [0], [1], [0, 0, 1, 1], [], []>} : vector<128x128xbf16>, vector<128x128xbf16>, vector<128x128xf32> -> vector<128x128xf32>
    %11 = vector.broadcast %1 : vector<128x1xf32> to vector<128x128xf32>
    %12 = arith.mulf %10, %11 : vector<128x128xf32>
    %cst_11 = arith.constant dense<0.000000e+00> : vector<128x128xf32>
    %13 = tpu.matmul %2, %3, %cst_11 {dimension_numbers = #tpu.dot_dimension_numbers<[1], [0], [0], [1], [0, 0, 1, 1], [], []>} : vector<128x128xbf16>, vector<128x128xbf16>, vector<128x128xf32> -> vector<128x128xf32>
    %14 = arith.truncf %12 : vector<128x128xf32> to vector<128x128xbf16>
    %cst_12 = arith.constant dense<0.000000e+00> : vector<128x128xf32>
    %15 = tpu.matmul %14, %4, %cst_12 {dimension_numbers = #tpu.dot_dimension_numbers<[1], [0], [0], [1], [0, 0, 1, 1], [], []>} : vector<128x128xbf16>, vector<128x128xbf16>, vector<128x128xf32> -> vector<128x128xf32>
    %16 = arith.addf %13, %15 : vector<128x128xf32>
    %17 = vector.broadcast %5 : vector<1x128xf32> to vector<128x128xf32>
    %18 = arith.addf %16, %17 : vector<128x128xf32>
    %cst_13 = arith.constant 0.000000e+00 : f32
    %19 = vector.broadcast %cst_13 : f32 to vector<128x128xf32>
    %20 = arith.maximumf %18, %19 : vector<128x128xf32>
    %21 = arith.truncf %20 : vector<128x128xf32> to vector<128x128xbf16>
    %c0_14 = arith.constant 0 : index
    %c0_15 = arith.constant 0 : index
    %22 = vector.load %arg6[%c0_14, %c0_15] : memref<128x128xbf16, #tpu.memory_space<vmem>>, vector<128x128xbf16>
    %c0_16 = arith.constant 0 : index
    %c0_17 = arith.constant 0 : index
    %23 = vector.load %arg7[%c0_16, %c0_17] : memref<128x128xbf16, #tpu.memory_space<vmem>>, vector<128x128xbf16>
    %c0_18 = arith.constant 0 : index
    %c0_19 = arith.constant 0 : index
    %24 = vector.load %arg8[%c0_18, %c0_19] : memref<1x128xf32, #tpu.memory_space<vmem>>, vector<1x128xf32>
    %25 = arith.extf %21 : vector<128x128xbf16> to vector<128x128xf32>
    %26 = vector.broadcast %1 : vector<128x1xf32> to vector<128x128xf32>
    %27 = arith.mulf %25, %26 : vector<128x128xf32>
    %28 = arith.truncf %27 : vector<128x128xf32> to vector<128x128xbf16>
    %cst_20 = arith.constant dense<0.000000e+00> : vector<128x128xf32>
    %29 = tpu.matmul %0, %28, %cst_20 {dimension_numbers = #tpu.dot_dimension_numbers<[1], [0], [0], [1], [0, 0, 1, 1], [], []>} : vector<128x128xbf16>, vector<128x128xbf16>, vector<128x128xf32> -> vector<128x128xf32>
    %30 = vector.broadcast %1 : vector<128x1xf32> to vector<128x128xf32>
    %31 = arith.mulf %29, %30 : vector<128x128xf32>
    %cst_21 = arith.constant dense<0.000000e+00> : vector<128x128xf32>
    %32 = tpu.matmul %21, %22, %cst_21 {dimension_numbers = #tpu.dot_dimension_numbers<[1], [0], [0], [1], [0, 0, 1, 1], [], []>} : vector<128x128xbf16>, vector<128x128xbf16>, vector<128x128xf32> -> vector<128x128xf32>
    %33 = arith.truncf %31 : vector<128x128xf32> to vector<128x128xbf16>
    %cst_22 = arith.constant dense<0.000000e+00> : vector<128x128xf32>
    %34 = tpu.matmul %33, %23, %cst_22 {dimension_numbers = #tpu.dot_dimension_numbers<[1], [0], [0], [1], [0, 0, 1, 1], [], []>} : vector<128x128xbf16>, vector<128x128xbf16>, vector<128x128xf32> -> vector<128x128xf32>
    %35 = arith.addf %32, %34 : vector<128x128xf32>
    %36 = vector.broadcast %24 : vector<1x128xf32> to vector<128x128xf32>
    %37 = arith.addf %35, %36 : vector<128x128xf32>
    %cst_23 = arith.constant 0.000000e+00 : f32
    %38 = vector.broadcast %cst_23 : f32 to vector<128x128xf32>
    %39 = arith.maximumf %37, %38 : vector<128x128xf32>
    %40 = arith.truncf %39 : vector<128x128xf32> to vector<128x128xbf16>
    %c0_24 = arith.constant 0 : index
    %c0_25 = arith.constant 0 : index
    %41 = vector.load %arg9[%c0_24, %c0_25] : memref<128x128xbf16, #tpu.memory_space<vmem>>, vector<128x128xbf16>
    %cst_26 = arith.constant dense<0.000000e+00> : vector<128x128xf32>
    %42 = tpu.matmul %40, %41, %cst_26 {dimension_numbers = #tpu.dot_dimension_numbers<[1], [0], [0], [1], [0, 0, 1, 1], [], []>} : vector<128x128xbf16>, vector<128x128xbf16>, vector<128x128xf32> -> vector<128x128xf32>
    %c0_27 = arith.constant 0 : index
    %c0_28 = arith.constant 0 : index
    %43 = vector.load %arg10[%c0_27, %c0_28] : memref<1x128xf32, #tpu.memory_space<vmem>>, vector<1x128xf32>
    %44 = vector.broadcast %43 : vector<1x128xf32> to vector<128x128xf32>
    %45 = arith.addf %42, %44 : vector<128x128xf32>
    %46 = arith.negf %45 : vector<128x128xf32>
    %47 = math.exp %46 : vector<128x128xf32>
    %cst_29 = arith.constant 1.000000e+00 : f32
    %48 = vector.broadcast %cst_29 : f32 to vector<128x128xf32>
    %49 = arith.addf %48, %47 : vector<128x128xf32>
    %50 = arith.divf %48, %49 : vector<128x128xf32>
    %51 = arith.truncf %50 : vector<128x128xf32> to vector<128x128xbf16>
    %c0_30 = arith.constant 0 : index
    %c0_31 = arith.constant 0 : index
    %52 = vector.load %arg11[%c0_30, %c0_31] : memref<128x128xbf16, #tpu.memory_space<vmem>>, vector<128x128xbf16>
    %cst_32 = arith.constant dense<0.000000e+00> : vector<128x128xf32>
    %53 = tpu.matmul %51, %52, %cst_32 {dimension_numbers = #tpu.dot_dimension_numbers<[1], [0], [0], [1], [0, 0, 1, 1], [], []>} : vector<128x128xbf16>, vector<128x128xbf16>, vector<128x128xf32> -> vector<128x128xf32>
    %c0_33 = arith.constant 0 : index
    %c0_34 = arith.constant 0 : index
    %54 = vector.load %arg12[%c0_33, %c0_34] : memref<1x128xf32, #tpu.memory_space<vmem>>, vector<1x128xf32>
    %55 = vector.broadcast %54 : vector<1x128xf32> to vector<128x128xf32>
    %56 = arith.addf %53, %55 : vector<128x128xf32>
    %57 = arith.negf %56 : vector<128x128xf32>
    %58 = math.exp %57 : vector<128x128xf32>
    %cst_35 = arith.constant 1.000000e+00 : f32
    %59 = vector.broadcast %cst_35 : f32 to vector<128x128xf32>
    %60 = arith.addf %59, %58 : vector<128x128xf32>
    %61 = arith.divf %59, %60 : vector<128x128xf32>
    %c0_36 = arith.constant 0 : index
    %c0_37 = arith.constant 0 : index
    %62 = vector.load %arg13[%c0_36, %c0_37] : memref<128x128xf32, #tpu.memory_space<vmem>>, vector<128x128xf32>
    tpu.vector_store %arg13[%c0_36, %c0_37], %61 {strides = array<i32>} : memref<128x128xf32, #tpu.memory_space<vmem>>, vector<128x128xf32>,
    return
  }
}

</mosaic_0001>

<bundles_post_ra>
// kernel: tpu_custom_call.1
= control target key start
LH: loop header
LB: loop body
LE: loop exit
PB: predicated region body
PF: predicated region fallthrough
CT: control target
= control target key end

     0   :  { %18 = vsyncpa [#allocation3], 0  ;;  %s3331_s0 = inlined_call_operand.vmem [shape: bf16[128,128], index: 0, kind: input, shape index: {}]   ;;  %s3332_s1 = inlined_call_operand.vmem [shape: f32[128,1], index: 1, kind: input, shape index: {}]   ;;  %s3333_s2 = inlined_call_operand.vmem [shape: bf16[128,128], index: 2, kind: input, shape index: {}]   ;;  %s3334_s3 = inlined_call_operand.hbm [shape: bf16[128,128], index: 3, kind: input, shape index: {}]   ;;  %s3335_s4 = inlined_call_operand.hbm [shape: bf16[128,128], index: 4, kind: input, shape index: {}]   ;;  %s3336_s5 = inlined_call_operand.vmem [shape: f32[1,128], index: 5, kind: input, shape index: {}]   ;;  %s3337_s6 = inlined_call_operand.hbm [shape: bf16[128,128], index: 6, kind: input, shape index: {}]   ;;  %s3338_s7 = inlined_call_operand.hbm [shape: bf16[128,128], index: 7, kind: input, shape index: {}]   ;;  %s3339_s8 = inlined_call_operand.vmem [shape: f32[1,128], index: 8, kind: input, shape index: {}]   ;;  %s3340_s9 = inlined_call_operand.hbm [shape: bf16[128,128], index: 9, kind: input, shape index: {}]   ;;  %s3341_s10 = inlined_call_operand.vmem [shape: f32[1,128], index: 10, kind: input, shape index: {}]   ;;  %s3342_s11 = inlined_call_operand.hbm [shape: bf16[128,128], index: 11, kind: input, shape index: {}]   ;;  %s3343_s12 = inlined_call_operand.vmem [shape: f32[1,128], index: 12, kind: input, shape index: {}]   ;;  %s3344_s13 = inlined_call_operand.hbm [shape: f32[128,128], index: 13, kind: output, shape index: {}]  }
   0x1   :  { %19 = vsyncpa [#allocation6], 0 }
   0x2   :  { %20 = vsyncpa [#allocation9], 0 }
   0x3   :  { %21 = vsyncpa [#allocation12], 0 }
   0x4   :  { %22 = vsyncpa [#allocation4], 0  ;;  %s46_s27 = sshll.u32 %s3335_s4, 4  ;;  %s2750_s28 = smov [#allocation5]   ;;  %s47_s27 = int_to_ptr.hbm [resolvable:$true] %s46_s27 }
   0x5   :  { %s48_s29 = sshll.u32 %s2750_s28, 4  ;;  %s74_s15 = sshll.u32 %s3338_s7, 4  ;;  %s49_s29 = int_to_ptr.vmem [resolvable:$true] %s48_s29  ;;  %s75_s15 = int_to_ptr.hbm [resolvable:$true] %s74_s15 }
   0x6   :  { %s2751_s16 = smov 64   ;;  %s2752_s17 = smov 4  }
   0x7   :  { %54 = dma.hbm_to_vmem [thread:$0]  %s47_s27, 1024, %s49_s29, [#allocation6], %s2751_s16, %s2751_s16, %s2752_s17  }
   0x8   :  { %s2753_s18 = smov [#allocation8]   ;;  %s33_s4 = sshll.u32 %s3334_s3, 4  ;;  %s34_s4 = int_to_ptr.hbm [resolvable:$true] %s33_s4 }
   0x9   :  { %s76_s19 = sshll.u32 %s2753_s18, 4  ;;  %s61_s23 = sshll.u32 %s3337_s6, 4  ;;  %s77_s19 = int_to_ptr.vmem [resolvable:$true] %s76_s19  ;;  %s62_s23 = int_to_ptr.hbm [resolvable:$true] %s61_s23 }
   0xa   :  { %82 = dma.hbm_to_vmem [thread:$0]  %s75_s15, 1024, %s77_s19, [#allocation9], %s2751_s16, %s2751_s16, %s2752_s17  }
   0xb   :  { %s2754_s24 = smov [#allocation2]   ;;  %s2755_s26 = smov [#allocation7]  }
   0xc   :  { %s35_s25 = sshll.u32 %s2754_s24, 4  ;;  %s63_s3 = sshll.u32 %s2755_s26, 4  ;;  %s36_s25 = int_to_ptr.vmem [resolvable:$true] %s35_s25  ;;  %s64_s3 = int_to_ptr.vmem [resolvable:$true] %s63_s3 }
   0xd   :  { %41 = dma.hbm_to_vmem [thread:$0]  %s34_s4, 1024, %s36_s25, [#allocation3], %s2751_s16, %s2751_s16, %s2752_s17  }
   0xe   :  { %s89_s29 = sshll.u32 %s3340_s9, 4  ;;  %s104_s14 = sshll.u32 %s3342_s11, 4  ;;  %s90_s29 = int_to_ptr.hbm [resolvable:$true] %s89_s29  ;;  %s105_s14 = int_to_ptr.hbm [resolvable:$true] %s104_s14 }
   0xf   :  { %69 = dma.hbm_to_vmem [thread:$0]  %s62_s23, 1024, %s64_s3, [#allocation6], %s2751_s16, %s2751_s16, %s2752_s17  }
  0x10   :  { %s2756_s15 = smov [#allocation10]   ;;  %s2757_s19 = smov [#allocation11]  }
  0x11   :  { %s91_s18 = sshll.u32 %s2756_s15, 4  ;;  %s106_s9 = sshll.u32 %s2757_s19, 4  ;;  %s92_s18 = int_to_ptr.vmem [resolvable:$true] %s91_s18  ;;  %s107_s9 = int_to_ptr.vmem [resolvable:$true] %s106_s9 }
  0x12   :  { %97 = dma.hbm_to_vmem [thread:$0]  %s90_s29, 1024, %s92_s18, [#allocation9], %s2751_s16, %s2751_s16, %s2752_s17  }
  0x13   :  { %112 = dma.hbm_to_vmem [thread:$0]  %s105_s14, 1024, %s107_s9, [#allocation12], %s2751_s16, %s2751_s16, %s2752_s17  }
  0x14   :  { %2740 = dma.done.wait [#allocation3], 1024  }
  0x15   :  { %2741 = vsyncadd [#allocation3], 4294966272 }
  0x16   :  { %2742 = dma.done.wait [#allocation6], 2048  }
  0x17   :  { %2743 = vsyncadd [#allocation6], 4294965248 }
  0x18   :  { %2744 = dma.done.wait [#allocation9], 2048  }
  0x19   :  { %2745 = vsyncadd [#allocation9], 4294965248 }
  0x1a   :  { %2746 = dma.done.wait [#allocation12], 1024  }
  0x1b   :  { %2747 = vsyncadd [#allocation12], 4294966272  ;;  %v2758_v0 = vmov 0   ;;  %v169_v1 = vld [vmem:[%s3332_s1 + $0x70] sm:$0xff]  ;;  %v167_v2 = vld [vmem:[%s3332_s1 + $0x60] sm:$0xff]  ;;  %s2057_s28 = sshll.u32 %s3344_s13, 4  ;;  %s2058_s28 = int_to_ptr.hbm [resolvable:$true] %s2057_s28 }
  0x1c   :  { %2439 = vset.pattern.permute.xlu2 %v2758_v0  ;;  %2438 = vset.pattern.permute.xlu1 %v2758_v0  ;;  %v165_v3 = vld [vmem:[%s3332_s1 + $0x50] sm:$0xff]  ;;  %v170_v4 = vld [vmem:[%s3332_s1 + $0x78] sm:$0xff]  ;;  %v168_v5 = vld [vmem:[%s3332_s1 + $0x68] sm:$0xff]  ;;  %s2760_s29 = smov 128   ;;  %s2761_s6 = smov 8  }
  0x1d   :  { %2437 = vset.pattern.permute.xlu0 %v2758_v0  ;;  %298 = vperm.xlu1 %2438, %v167_v2   ;;  %v166_v6 = vld [vmem:[%s3332_s1 + $0x58] sm:$0xff]  ;;  %v164_v7 = vld [vmem:[%s3332_s1 + $0x48] sm:$0xff]  ;;  %v163_v8 = vld [vmem:[%s3332_s1 + $0x40] sm:$0xff] }
  0x1e   :  { %308 = vperm.xlu0 %2437, %v169_v1   ;;  %288 = vperm.xlu2 %2439, %v165_v3   ;;  %v161_v9 = vld [vmem:[%s3332_s1 + $0x30] sm:$0xff]  ;;  %v162_v10 = vld [vmem:[%s3332_s1 + $0x38] sm:$0xff]  ;;  %v159_v11 = vld [vmem:[%s3332_s1 + $0x20] sm:$0xff] }
  0x1f   :  { %v160_v12 = vld [vmem:[%s3332_s1 + $0x28] sm:$0xff]  ;;  %v158_v13 = vld [vmem:[%s3332_s1 + $0x18] sm:$0xff]  ;;  %v157_v14 = vld [vmem:[%s3332_s1 + $0x10] sm:$0xff] }
  0x20   :  { %v155_v15 = vld [vmem:[%s3332_s1] sm:$0xff]  ;;  %v156_v16 = vld [vmem:[%s3332_s1 + $0x8] sm:$0xff]  ;;  %v185_v20 = vld [vmem:[%s3333_s2 + $0x38] sm:$0xff]  }
  0x21   :  { %v234_v21 = vunpack.c.l.bf16 %v185_v20  ;;  %v235_v22 = vunpack.c.h.bf16 %v185_v20  ;;  %v183_v23 = vld [vmem:[%s3333_s2 + $0x30] sm:$0xff]   ;;  %v181_v26 = vld [vmem:[%s3333_s2 + $0x28] sm:$0xff]   ;;  %v179_v36 = vld [vmem:[%s3333_s2 + $0x20] sm:$0xff]  }
  0x22   :  { %v233_v25 = vunpack.c.h.bf16 %v183_v23  ;;  %v232_v31 = vunpack.c.l.bf16 %v183_v23  ;;  %v230_v32 = vunpack.c.l.bf16 %v181_v26  ;;  %v231_v35 = vunpack.c.h.bf16 %v181_v26  ;;  %v177_v46 = vld [vmem:[%s3333_s2 + $0x18] sm:$0xff]   ;;  %v175_v52 = vld [vmem:[%s3333_s2 + $0x10] sm:$0xff]   ;;  %v173_v60 = vld [vmem:[%s3333_s2 + $0x8] sm:$0xff]  }
  0x23   :  { %v228_v41 = vunpack.c.l.bf16 %v179_v36  ;;  %v229_v42 = vunpack.c.h.bf16 %v179_v36  ;;  %v226_v50 = vunpack.c.l.bf16 %v177_v46  ;;  %v227_v51 = vunpack.c.h.bf16 %v177_v46  ;;  %v2991_v20 = vld [vmem:[%s3331_s0] sm:$0xff]  ;;  %v3009_v23 = vld [vmem:[%s3331_s0 + $0x18] sm:$0xff]  ;;  %v2379_v36 = vld [vmem:[#allocation2 + $0x10] sm:$0xff] }
  0x24   :  { %v224_v54 = vunpack.c.l.bf16 %v175_v52  ;;  %v225_v59 = vunpack.c.h.bf16 %v175_v52  ;;  %v222_v1 = vunpack.c.l.bf16 %v173_v60  ;;  %v223_v2 = vunpack.c.h.bf16 %v173_v60  ;;  %v3015_v26 = vld [vmem:[%s3331_s0 + $0x20] sm:$0xff]  ;;  %v3030_v46 = vld [vmem:[%s3331_s0 + $0x30] sm:$0xff]  ;;  %v2372_v60 = vld [vmem:[%s3333_s2 + $0x18] sm:$0xff] }
  0x25   :  { %303 = vperm.xlu1 %2438, %v168_v5   ;;  %v2371_v52 = vld [vmem:[%s3333_s2 + $0x10] sm:$0xff] }
  0x26   :  { %313 = vperm.xlu0 %2437, %v170_v4   ;;  %293 = vperm.xlu2 %2439, %v166_v6  }
  0x2d   :  { %283 = vperm.xlu1 %2438, %v164_v7  }
  0x2e   :  { %278 = vperm.xlu0 %2437, %v163_v8   ;;  %268 = vperm.xlu2 %2439, %v161_v9   ;;  %v171_v8 = vld [vmem:[%s3333_s2] sm:$0xff]  }
  0x35   :  { %258 = vperm.xlu1 %2438, %v159_v11   ;;  %v221_v11 = vunpack.c.h.bf16 %v171_v8 }
  0x36   :  { %273 = vperm.xlu0 %2437, %v162_v10   ;;  %263 = vperm.xlu2 %2439, %v160_v12   ;;  %v220_v10 = vunpack.c.l.bf16 %v171_v8 }
  0x3d   :  { %253 = vperm.xlu1 %2438, %v158_v13  }
  0x3e   :  { %248 = vperm.xlu0 %2437, %v157_v14   ;;  %238 = vperm.xlu2 %2439, %v155_v15  }
  0x46   :  { %243 = vperm.xlu0 %2437, %v156_v16  }
  0x78   :  { %v2916_v17 = vpop.permute.xlu2 %288 }
  0x79   :  { %v326_v38 = vmul.f32 %v2916_v17, %v230_v32  ;;  %v2391_v32 = vld [vmem:[#allocation5 + $0x30] sm:$0xff] }
  0x80   :  { %v2928_v24 = vpop.permute.xlu2 %293 }
  0x81   :  { %v327_v40 = vmul.f32 %v2928_v24, %v231_v35  ;;  %v3021_v35 = vld [vmem:[%s3331_s0 + $0x28] sm:$0xff] }
  0x83   :  { %v337_v47 = vpack.c.bf16 %v327_v40, %v326_v38  ;;  %v2378_v38 = vld [vmem:[#allocation2 + $0x8] sm:$0xff]  ;;  %v2377_v40 = vld [vmem:[#allocation2] sm:$0xff] }
  0x88   :  { %v2950_v45 = vpop.permute.xlu2 %268 }
  0x89   :  { %v322_v57 = vmul.f32 %v2950_v45, %v226_v50  ;;  %v2370_v50 = vld [vmem:[%s3333_s2 + $0x8] sm:$0xff] }
  0x8f   :  { %v2920_v19 = vpop.permute.xlu1 %298 }
  0x90   :  { %v2918_v18 = vpop.permute.xlu0 %308  ;;  %v328_v37 = vmul.f32 %v2920_v19, %v232_v31  ;;  %v2970_v63 = vpop.permute.xlu2 %263  ;;  %v2382_v31 = vld [vmem:[#allocation2 + $0x28] sm:$0xff] }
  0x91   :  { %v330_v29 = vmul.f32 %v2918_v18, %v234_v21  ;;  %v321_v0 = vmul.f32 %v2970_v63, %v225_v59  ;;  %v2997_v21 = vld [vmem:[%s3331_s0 + $0x8] sm:$0xff] }
  0x97   :  { %v2935_v28 = vpop.permute.xlu1 %303 }
  0x98   :  { %v2933_v27 = vpop.permute.xlu0 %313  ;;  %v329_v34 = vmul.f32 %v2935_v28, %v233_v25  ;;  %v2982_v12 = vpop.permute.xlu2 %238  ;;  %v2384_v25 = vld [vmem:[#allocation2 + $0x38] sm:$0xff] }
  0x99   :  { %v331_v30 = vmul.f32 %v2933_v27, %v235_v22  ;;  %v316_v14 = vmul.f32 %v2982_v12, %v220_v10  ;;  %v3003_v22 = vld [vmem:[%s3331_s0 + $0x10] sm:$0xff]  ;;  %654 = vmatpush.bf16.msra.mxu2 %v2384_v25 }
  0x9a   :  { %v338_v39 = vpack.c.bf16 %v329_v34, %v328_v37  ;;  %v2380_v34 = vld [vmem:[#allocation2 + $0x18] sm:$0xff]  ;;  %v2390_v37 = vld [vmem:[#allocation5 + $0x28] sm:$0xff] }
  0x9b   :  { %v339_v33 = vpack.c.bf16 %v331_v30, %v330_v29  ;;  %v2383_v29 = vld [vmem:[#allocation2 + $0x30] sm:$0xff]  ;;  %v2392_v30 = vld [vmem:[#allocation5 + $0x38] sm:$0xff] }
  0x9c   :  { %509 = vmatpush.bf16.msra.mxu1 %v2392_v30  ;;  %v2375_v30 = vld [vmem:[%s3333_s2 + $0x30] sm:$0xff] }
  0x9d   :  { %388 = vmatpush.bf16.msra.mxu0 %v339_v33  ;;  %655 = vmatpush.bf16.msra.mxu2 %v2383_v29  ;;  %v2381_v33 = vld [vmem:[#allocation2 + $0x20] sm:$0xff] }
  0x9f   :  { %v2946_v43 = vpop.permute.xlu1 %283 }
  0xa0   :  { %v2948_v44 = vpop.permute.xlu0 %278  ;;  %v325_v49 = vmul.f32 %v2946_v43, %v229_v42  ;;  %510 = vmatpush.bf16.msra.mxu1 %v2391_v32  ;;  %v2369_v42 = vld [vmem:[%s3333_s2] sm:$0xff] }
  0xa1   :  { %389 = vmatpush.bf16.msra.mxu0 %v338_v39  ;;  %v324_v48 = vmul.f32 %v2948_v44, %v228_v41  ;;  %656 = vmatpush.bf16.msra.mxu2 %v2382_v31  ;;  %v2389_v39 = vld [vmem:[#allocation5 + $0x20] sm:$0xff]  ;;  %v2388_v41 = vld [vmem:[#allocation5 + $0x18] sm:$0xff] }
  0xa3   :  { %v336_v53 = vpack.c.bf16 %v325_v49, %v324_v48  ;;  %v2386_v48 = vld [vmem:[#allocation5 + $0x8] sm:$0xff]  ;;  %v2385_v49 = vld [vmem:[#allocation5] sm:$0xff] }
  0xa4   :  { %511 = vmatpush.bf16.msra.mxu1 %v2390_v37  ;;  %v2376_v37 = vld [vmem:[%s3333_s2 + $0x38] sm:$0xff] }
  0xa5   :  { %390 = vmatpush.bf16.msra.mxu0 %v337_v47  ;;  %657 = vmatpush.bf16.msra.mxu2 %v2381_v33  ;;  %v2387_v47 = vld [vmem:[#allocation5 + $0x10] sm:$0xff] }
  0xa7   :  { %v2962_v56 = vpop.permute.xlu1 %258 }
  0xa8   :  { %v2960_v55 = vpop.permute.xlu0 %273  ;;  %v320_v62 = vmul.f32 %v2962_v56, %v224_v54  ;;  %512 = vmatpush.bf16.msra.mxu1 %v2389_v39 }
  0xa9   :  { %391 = vmatpush.bf16.msra.mxu0 %v336_v53  ;;  %v323_v58 = vmul.f32 %v2960_v55, %v227_v51  ;;  %658 = vmatpush.bf16.msra.mxu2 %v2380_v34  ;;  %v3039_v51 = vld [vmem:[%s3331_s0 + $0x38] sm:$0xff] }
  0xaa   :  { %v334_v3 = vpack.c.bf16 %v321_v0, %v320_v62 }
  0xab   :  { %v335_v61 = vpack.c.bf16 %v323_v58, %v322_v57 }
  0xac   :  { %513 = vmatpush.bf16.msra.mxu1 %v2388_v41 }
  0xad   :  { %392 = vmatpush.bf16.msra.mxu0 %v335_v61  ;;  %659 = vmatpush.bf16.msra.mxu2 %v2379_v36 }
  0xaf   :  { %v2973_v4 = vpop.permute.xlu1 %253 }
  0xb0   :  { %v2975_v5 = vpop.permute.xlu0 %248  ;;  %v319_v7 = vmul.f32 %v2973_v4, %v223_v2  ;;  %514 = vmatpush.bf16.msra.mxu1 %v2387_v47  ;;  %v2400_v47 = vld [vmem:[#allocation7 + $0x38] sm:$0xff] }
  0xb1   :  { %393 = vmatpush.bf16.msra.mxu0 %v334_v3  ;;  %v318_v6 = vmul.f32 %v2975_v5, %v222_v1  ;;  %660 = vmatpush.bf16.msra.mxu2 %v2378_v38  ;;  %v2373_v3 = vld [vmem:[%s3333_s2 + $0x20] sm:$0xff] }
  0xb3   :  { %v333_v9 = vpack.c.bf16 %v319_v7, %v318_v6 }
  0xb4   :  { %515 = vmatpush.bf16.msra.mxu1 %v2386_v48  ;;  %v2399_v48 = vld [vmem:[#allocation7 + $0x30] sm:$0xff] }
  0xb5   :  { %394 = vmatpush.bf16.msra.mxu0 %v333_v9  ;;  %661 = vmatpush.bf16.msra.mxu2 %v2377_v40 }
  0xb8   :  { %v2984_v13 = vpop.permute.xlu0 %243  ;;  %662 = vmatmul.bf16.vlgmr.msra.gmra.mxu2 %v2369_v42  ;;  %516 = vmatpush.bf16.msra.mxu1 %v2385_v49 }
  0xb9   :  { %v317_v15 = vmul.f32 %v2984_v13, %v221_v11  ;;  %v2374_v11 = vld [vmem:[%s3333_s2 + $0x28] sm:$0xff] }
  0xbb   :  { %v332_v16 = vpack.c.bf16 %v317_v15, %v316_v14 }
  0xbc   :  { %1093 = vmatpush.bf16.msrb.mxu1 %v2400_v47 }
  0xbd   :  { %395 = vmatpush.bf16.msra.mxu0 %v332_v16 }
  0xc0   :  { %396 = vmatmul.bf16.vlgmr.msra.gmra.mxu0 %v2991_v20  ;;  %1094 = vmatpush.bf16.msrb.mxu1 %v2399_v48 }
  0xc8   :  { %667 = vmatmul.bf16.gmra.mxu2 %v2370_v50  ;;  %v2398_v50 = vld [vmem:[#allocation7 + $0x28] sm:$0xff] }
  0xc9   :  { %1095 = vmatpush.bf16.msrb.mxu1 %v2398_v50 }
  0xd0   :  { %401 = vmatmul.bf16.gmra.mxu0 %v2997_v21 }
  0xd8   :  { %672 = vmatmul.bf16.gmra.mxu2 %v2371_v52 }
  0xe0   :  { %406 = vmatmul.bf16.gmra.mxu0 %v3003_v22 }
  0xe8   :  { %677 = vmatmul.bf16.gmra.mxu2 %v2372_v60  ;;  %v2396_v60 = vld [vmem:[#allocation7 + $0x18] sm:$0xff] }
  0xf0   :  { %411 = vmatmul.bf16.gmra.mxu0 %v3009_v23 }
  0xf8   :  { %682 = vmatmul.bf16.gmra.mxu2 %v2373_v3 }
 0x100   :  { %416 = vmatmul.bf16.gmra.mxu0 %v3015_v26 }
 0x108   :  { %687 = vmatmul.bf16.gmra.mxu2 %v2374_v11 }
 0x110   :  { %421 = vmatmul.bf16.gmra.mxu0 %v3021_v35 }
 0x118   :  { %692 = vmatmul.bf16.gmra.mxu2 %v2375_v30 }
 0x120   :  { %426 = vmatmul.bf16.gmra.mxu0 %v3030_v46 }
 0x128   :  { %697 = vmatmul.bf16.gmra.mxu2 %v2376_v37 }
 0x130   :  { %431 = vmatmul.bf16.gmra.mxu0 %v3039_v51 }
 0x13d   :  { %v397_v53 = vpop.f32.mrf.mxu0 }
 0x13e   :  { %v437_v57 = vmul.f32 %v397_v53, %v2982_v12 }
 0x145   :  { %v399_v54 = vpop.f32.mrf.mxu0 }
 0x146   :  { %v438_v58 = vmul.f32 %v399_v54, %v2984_v13 }
 0x148   :  { %v453_v59 = vpack.c.bf16 %v438_v58, %v437_v57  ;;  %v2397_v58 = vld [vmem:[#allocation7 + $0x20] sm:$0xff] }
 0x149   :  { %1096 = vmatpush.bf16.msrb.mxu1 %v2397_v58 }
 0x14a   :  { %517 = vmatmul.bf16.vlgmr.msra.gmra.mxu1 %v453_v59  ;;  %v663_v59 = vpop.f32.mrf.mxu2 }
 0x14d   :  { %v402_v61 = vpop.f32.mrf.mxu0  ;;  %1097 = vmatpush.bf16.msrb.mxu1 %v2396_v60 }
 0x14e   :  { %v439_v0 = vmul.f32 %v402_v61, %v2975_v5 }
 0x155   :  { %v404_v62 = vpop.f32.mrf.mxu0 }
 0x156   :  { %v440_v1 = vmul.f32 %v404_v62, %v2973_v4  ;;  %v2395_v62 = vld [vmem:[#allocation7 + $0x10] sm:$0xff] }
 0x157   :  { %1098 = vmatpush.bf16.msrb.mxu1 %v2395_v62 }
 0x158   :  { %v454_v2 = vpack.c.bf16 %v440_v1, %v439_v0  ;;  %v665_v0 = vpop.f32.mrf.mxu2  ;;  %v2394_v1 = vld [vmem:[#allocation7 + $0x8] sm:$0xff] }
 0x15a   :  { %522 = vmatmul.bf16.gmra.mxu1 %v454_v2 }
 0x15b   :  { %1099 = vmatpush.bf16.msrb.mxu1 %v2394_v1 }
 0x15d   :  { %v407_v6 = vpop.f32.mrf.mxu0 }
 0x15e   :  { %v441_v8 = vmul.f32 %v407_v6, %v2962_v56 }
 0x165   :  { %v409_v7 = vpop.f32.mrf.mxu0 }
 0x166   :  { %v442_v9 = vmul.f32 %v409_v7, %v2970_v63 }
 0x168   :  { %v455_v10 = vpack.c.bf16 %v442_v9, %v441_v8  ;;  %v2393_v8 = vld [vmem:[#allocation7] sm:$0xff]  ;;  %v668_v9 = vpop.f32.mrf.mxu2 }
 0x169   :  { %1100 = vmatpush.bf16.msrb.mxu1 %v2393_v8 }
 0x16a   :  { %527 = vmatmul.bf16.gmra.mxu1 %v455_v10  ;;  %v3079_v10 = vld [vmem:[%s3336_s5] ss:$0 sm:$0xff] }
 0x16d   :  { %v412_v14 = vpop.f32.mrf.mxu0 }
 0x16e   :  { %v443_v16 = vmul.f32 %v412_v14, %v2950_v45 }
 0x170   :  { %v670_v14 = vpop.f32.mrf.mxu2 }
 0x175   :  { %v414_v15 = vpop.f32.mrf.mxu0 }
 0x176   :  { %v444_v25 = vmul.f32 %v414_v15, %v2960_v55 }
 0x178   :  { %v456_v29 = vpack.c.bf16 %v444_v25, %v443_v16 }
 0x17a   :  { %532 = vmatmul.bf16.gmra.mxu1 %v456_v29 }
 0x17d   :  { %v417_v31 = vpop.f32.mrf.mxu0 }
 0x17e   :  { %v445_v33 = vmul.f32 %v417_v31, %v2948_v44  ;;  %v673_v31 = vpop.f32.mrf.mxu2 }
 0x185   :  { %v419_v32 = vpop.f32.mrf.mxu0 }
 0x186   :  { %v446_v34 = vmul.f32 %v419_v32, %v2946_v43 }
 0x188   :  { %v457_v36 = vpack.c.bf16 %v446_v34, %v445_v33 }
 0x18a   :  { %537 = vmatmul.bf16.gmra.mxu1 %v457_v36 }
 0x18d   :  { %v422_v38 = vpop.f32.mrf.mxu0 }
 0x18e   :  { %v447_v40 = vmul.f32 %v422_v38, %v2916_v17 }
 0x195   :  { %v424_v39 = vpop.f32.mrf.mxu0 }
 0x196   :  { %v448_v41 = vmul.f32 %v424_v39, %v2928_v24 }
 0x198   :  { %v458_v42 = vpack.c.bf16 %v448_v41, %v447_v40 }
 0x19a   :  { %542 = vmatmul.bf16.gmra.mxu1 %v458_v42 }
 0x19d   :  { %v427_v49 = vpop.f32.mrf.mxu0 }
 0x19e   :  { %v449_v53 = vmul.f32 %v427_v49, %v2920_v19 }
 0x1a5   :  { %v429_v52 = vpop.f32.mrf.mxu0 }
 0x1a6   :  { %v450_v54 = vmul.f32 %v429_v52, %v2935_v28  ;;  %v675_v52 = vpop.f32.mrf.mxu2 }
 0x1a8   :  { %v459_v57 = vpack.c.bf16 %v450_v54, %v449_v53 }
 0x1aa   :  { %547 = vmatmul.bf16.gmra.mxu1 %v459_v57 }
 0x1ad   :  { %v432_v61 = vpop.f32.mrf.mxu0 }
 0x1ae   :  { %v451_v3 = vmul.f32 %v432_v61, %v2918_v18  ;;  %v678_v62 = vpop.f32.mrf.mxu2 }
 0x1b5   :  { %v434_v2 = vpop.f32.mrf.mxu0 }
 0x1b6   :  { %v452_v6 = vmul.f32 %v434_v2, %v2933_v27 }
 0x1b8   :  { %v460_v7 = vpack.c.bf16 %v452_v6, %v451_v3 }
 0x1ba   :  { %552 = vmatmul.bf16.gmra.mxu1 %v460_v7 }
 0x1c7   :  { %v518_v11 = vpop.f32.mrf.mxu1 }
 0x1c8   :  { %v664_v15 = vadd.f32 %v663_v59, %v518_v11 }
 0x1ca   :  { %v706_v16 = vadd.f32 %v3079_v10, %v664_v15 }
 0x1cc   :  { %v722_v25 = vmax.f32 %v706_v16, 0.0 }
 0x1ce   :  { %v738_v32 = vpack.c.bf16 %v722_v25, %v722_v25 }
 0x1cf   :  { %v520_v29 = vpop.f32.mrf.mxu1 }
 0x1d0   :  { %v666_v30 = vadd.f32 %v665_v0, %v520_v29  ;;  %v787_v37 = vunpack.c.l.bf16 %v738_v32  ;;  %v1013_v39 = vunpack.c.l.b16 %v738_v32 }
 0x1d2   :  { %v707_v33 = vadd.f32 %v3079_v10, %v666_v30  ;;  %v3085_v49 = vmul.f32 %v787_v37, %v2982_v12  ;;  %v680_v30 = vpop.f32.mrf.mxu2 }
 0x1d4   :  { %v723_v34 = vmax.f32 %v707_v33, 0.0 }
 0x1d6   :  { %v739_v36 = vpack.c.bf16 %v723_v34, %v723_v34 }
 0x1d7   :  { %v523_v38 = vpop.f32.mrf.mxu1 }
 0x1d8   :  { %v669_v40 = vadd.f32 %v668_v9, %v523_v38  ;;  %v1014_v41 = vunpack.c.l.b16 %v739_v36  ;;  %v788_v42 = vunpack.c.l.bf16 %v739_v36 }
 0x1da   :  { %v708_v47 = vadd.f32 %v3079_v10, %v669_v40  ;;  %v1029_v48 = vpack.c.b16 %v1014_v41, %v1013_v39  ;;  %v3088_v50 = vmul.f32 %v788_v42, %v2984_v13 }
 0x1dc   :  { %1101 = vmatmul.bf16.vlgmr.msrb.gmra.mxu1 %v1029_v48  ;;  %v819_v53 = vpack.c.bf16 %v3088_v50, %v3085_v49  ;;  %v724_v54 = vmax.f32 %v708_v47, 0.0  ;;  %v683_v47 = vpop.f32.mrf.mxu2  ;;  %v2403_v49 = vld [vmem:[#allocation8 + $0x10] sm:$0xff]  ;;  %v2401_v50 = vld [vmem:[#allocation8] sm:$0xff] }
 0x1de   :  { %v740_v59 = vpack.c.bf16 %v724_v54, %v724_v54 }
 0x1df   :  { %v525_v57 = vpop.f32.mrf.mxu1 }
 0x1e0   :  { %v671_v58 = vadd.f32 %v670_v14, %v525_v57  ;;  %v789_v1 = vunpack.c.l.bf16 %v740_v59  ;;  %v1015_v6 = vunpack.c.l.b16 %v740_v59 }
 0x1e2   :  { %v709_v60 = vadd.f32 %v3079_v10, %v671_v58  ;;  %v3095_v15 = vmul.f32 %v789_v1, %v2975_v5 }
 0x1e4   :  { %v725_v61 = vmax.f32 %v709_v60, 0.0  ;;  %v685_v1 = vpop.f32.mrf.mxu2 }
 0x1e6   :  { %v741_v0 = vpack.c.bf16 %v725_v61, %v725_v61 }
 0x1e7   :  { %v528_v2 = vpop.f32.mrf.mxu1 }
 0x1e8   :  { %v674_v3 = vadd.f32 %v673_v31, %v528_v2  ;;  %v1016_v7 = vunpack.c.l.b16 %v741_v0  ;;  %v790_v8 = vunpack.c.l.bf16 %v741_v0 }
 0x1ea   :  { %v710_v9 = vadd.f32 %v3079_v10, %v674_v3  ;;  %v1030_v11 = vpack.c.b16 %v1016_v7, %v1015_v6  ;;  %v3098_v14 = vmul.f32 %v790_v8, %v2973_v4 }
 0x1ec   :  { %1106 = vmatmul.bf16.gmra.mxu1 %v1030_v11  ;;  %v820_v16 = vpack.c.bf16 %v3098_v14, %v3095_v15  ;;  %v726_v25 = vmax.f32 %v710_v9, 0.0  ;;  %v2404_v15 = vld [vmem:[#allocation8 + $0x18] sm:$0xff]  ;;  %v2415_v14 = vld [vmem:[#allocation10 + $0x30] sm:$0xff] }
 0x1ee   :  { %v742_v32 = vpack.c.bf16 %v726_v25, %v726_v25 }
 0x1ef   :  { %v530_v29 = vpop.f32.mrf.mxu1 }
 0x1f0   :  { %v676_v31 = vadd.f32 %v675_v52, %v530_v29  ;;  %v791_v37 = vunpack.c.l.bf16 %v742_v32  ;;  %v1017_v40 = vunpack.c.l.b16 %v742_v32 }
 0x1f2   :  { %v711_v33 = vadd.f32 %v3079_v10, %v676_v31  ;;  %v3105_v57 = vmul.f32 %v791_v37, %v2962_v56 }
 0x1f4   :  { %v727_v34 = vmax.f32 %v711_v33, 0.0 }
 0x1f6   :  { %v743_v36 = vpack.c.bf16 %v727_v34, %v727_v34  ;;  %v688_v34 = vpop.f32.mrf.mxu2 }
 0x1f7   :  { %v533_v38 = vpop.f32.mrf.mxu1 }
 0x1f8   :  { %v679_v39 = vadd.f32 %v678_v62, %v533_v38  ;;  %v1018_v41 = vunpack.c.l.b16 %v743_v36  ;;  %v792_v42 = vunpack.c.l.bf16 %v743_v36 }
 0x1fa   :  { %v712_v48 = vadd.f32 %v3079_v10, %v679_v39  ;;  %v1031_v54 = vpack.c.b16 %v1018_v41, %v1017_v40  ;;  %v3108_v52 = vmul.f32 %v792_v42, %v2970_v63 }
 0x1fc   :  { %1111 = vmatmul.bf16.gmra.mxu1 %v1031_v54  ;;  %v821_v58 = vpack.c.bf16 %v3108_v52, %v3105_v57  ;;  %v728_v59 = vmax.f32 %v712_v48, 0.0  ;;  %v2405_v57 = vld [vmem:[#allocation8 + $0x20] sm:$0xff] }
 0x1fe   :  { %v744_v62 = vpack.c.bf16 %v728_v59, %v728_v59  ;;  %v690_v48 = vpop.f32.mrf.mxu2 }
 0x1ff   :  { %v535_v60 = vpop.f32.mrf.mxu1 }
 0x200   :  { %v681_v61 = vadd.f32 %v680_v30, %v535_v60  ;;  %v793_v6 = vunpack.c.l.bf16 %v744_v62  ;;  %v1019_v9 = vunpack.c.l.b16 %v744_v62 }
 0x202   :  { %v713_v0 = vadd.f32 %v3079_v10, %v681_v61  ;;  %v3114_v31 = vmul.f32 %v793_v6, %v2950_v45 }
 0x204   :  { %v729_v2 = vmax.f32 %v713_v0, 0.0 }
 0x206   :  { %v745_v3 = vpack.c.bf16 %v729_v2, %v729_v2 }
 0x207   :  { %v538_v7 = vpop.f32.mrf.mxu1 }
 0x208   :  { %v684_v8 = vadd.f32 %v683_v47, %v538_v7  ;;  %v1020_v11 = vunpack.c.l.b16 %v745_v3  ;;  %v794_v25 = vunpack.c.l.bf16 %v745_v3  ;;  %v693_v3 = vpop.f32.mrf.mxu2 }
 0x20a   :  { %v1032_v29 = vpack.c.b16 %v1020_v11, %v1019_v9  ;;  %v3117_v32 = vmul.f32 %v794_v25, %v2960_v55  ;;  %v714_v30 = vadd.f32 %v3079_v10, %v684_v8 }
 0x20c   :  { %1116 = vmatmul.bf16.gmra.mxu1 %v1032_v29  ;;  %v822_v33 = vpack.c.bf16 %v3117_v32, %v3114_v31  ;;  %v730_v37 = vmax.f32 %v714_v30, 0.0  ;;  %v2406_v31 = vld [vmem:[#allocation8 + $0x28] sm:$0xff] }
 0x20d   :  { %v2414_v32 = vld [vmem:[#allocation10 + $0x28] sm:$0xff] }
 0x20e   :  { %v3123_v40 = vpack.c.bf16 %v730_v37, %v730_v37 }
 0x20f   :  { %v540_v36 = vpop.f32.mrf.mxu1 }
 0x210   :  { %v686_v38 = vadd.f32 %v685_v1, %v540_v36  ;;  %v1021_v54 = vunpack.c.l.b16 %v3123_v40  ;;  %v695_v37 = vpop.f32.mrf.mxu2 }
 0x212   :  { %v715_v39 = vadd.f32 %v3079_v10, %v686_v38 }
 0x214   :  { %v731_v41 = vmax.f32 %v715_v39, 0.0 }
 0x216   :  { %v3125_v42 = vpack.c.bf16 %v731_v41, %v731_v41 }
 0x217   :  { %v543_v47 = vpop.f32.mrf.mxu1 }
 0x218   :  { %v1022_v59 = vunpack.c.l.b16 %v3125_v42  ;;  %v689_v60 = vadd.f32 %v688_v34, %v543_v47 }
 0x21a   :  { %v1033_v61 = vpack.c.b16 %v1022_v59, %v1021_v54  ;;  %v716_v62 = vadd.f32 %v3079_v10, %v689_v60  ;;  %v698_v59 = vpop.f32.mrf.mxu2 }
 0x21c   :  { %1121 = vmatmul.bf16.gmra.mxu1 %v1033_v61  ;;  %v732_v1 = vmax.f32 %v716_v62, 0.0 }
 0x21e   :  { %v748_v7 = vpack.c.bf16 %v732_v1, %v732_v1 }
 0x21f   :  { %v545_v0 = vpop.f32.mrf.mxu1 }
 0x220   :  { %v691_v2 = vadd.f32 %v690_v48, %v545_v0  ;;  %v1023_v25 = vunpack.c.l.b16 %v748_v7 }
 0x222   :  { %v717_v6 = vadd.f32 %v3079_v10, %v691_v2 }
 0x224   :  { %v733_v8 = vmax.f32 %v717_v6, 0.0 }
 0x226   :  { %v749_v9 = vpack.c.bf16 %v733_v8, %v733_v8  ;;  %v700_v8 = vpop.f32.mrf.mxu2 }
 0x227   :  { %v548_v11 = vpop.f32.mrf.mxu1 }
 0x228   :  { %v1024_v29 = vunpack.c.l.b16 %v749_v9  ;;  %v694_v30 = vadd.f32 %v693_v3, %v548_v11 }
 0x22a   :  { %v1034_v36 = vpack.c.b16 %v1024_v29, %v1023_v25  ;;  %v718_v34 = vadd.f32 %v3079_v10, %v694_v30 }
 0x22c   :  { %1126 = vmatmul.bf16.gmra.mxu1 %v1034_v36  ;;  %v734_v39 = vmax.f32 %v718_v34, 0.0 }
 0x22e   :  { %v750_v48 = vpack.c.bf16 %v734_v39, %v734_v39 }
 0x22f   :  { %v550_v38 = vpop.f32.mrf.mxu1 }
 0x230   :  { %v696_v41 = vadd.f32 %v695_v37, %v550_v38  ;;  %v1025_v62 = vunpack.c.l.b16 %v750_v48 }
 0x232   :  { %v719_v47 = vadd.f32 %v3079_v10, %v696_v41 }
 0x234   :  { %v735_v54 = vmax.f32 %v719_v47, 0.0 }
 0x236   :  { %v751_v60 = vpack.c.bf16 %v735_v54, %v735_v54 }
 0x237   :  { %v553_v61 = vpop.f32.mrf.mxu1 }
 0x238   :  { %v1026_v0 = vunpack.c.l.b16 %v751_v60  ;;  %v699_v1 = vadd.f32 %v698_v59, %v553_v61  ;;  %v800_v47 = vunpack.c.l.bf16 %v751_v60  ;;  %v796_v60 = vunpack.c.l.bf16 %v3125_v42 }
 0x23a   :  { %v720_v2 = vadd.f32 %v3079_v10, %v699_v1  ;;  %v1035_v3 = vpack.c.b16 %v1026_v0, %v1025_v62  ;;  %v799_v62 = vunpack.c.l.bf16 %v750_v48  ;;  %v816_v1 = vmul.f32 %v800_v47, %v2935_v28 }
 0x23c   :  { %1131 = vmatmul.bf16.gmra.mxu1 %v1035_v3  ;;  %v736_v6 = vmax.f32 %v720_v2, 0.0  ;;  %v798_v2 = vunpack.c.l.bf16 %v749_v9  ;;  %v797_v3 = vunpack.c.l.bf16 %v748_v7 }
 0x23e   :  { %v752_v29 = vpack.c.bf16 %v736_v6, %v736_v6 }
 0x23f   :  { %v555_v11 = vpop.f32.mrf.mxu1 }
 0x240   :  { %v701_v25 = vadd.f32 %v700_v8, %v555_v11  ;;  %v801_v34 = vunpack.c.l.bf16 %v752_v29  ;;  %v1027_v38 = vunpack.c.l.b16 %v752_v29  ;;  %v814_v8 = vmul.f32 %v798_v2, %v2928_v24  ;;  %v2410_v2 = vld [vmem:[#allocation10 + $0x8] sm:$0xff] }
 0x241   :  { %v813_v11 = vmul.f32 %v797_v3, %v2916_v17  ;;  %v812_v29 = vmul.f32 %v796_v60, %v2946_v43  ;;  %v2409_v60 = vld [vmem:[#allocation10] sm:$0xff] }
 0x242   :  { %v721_v30 = vadd.f32 %v3079_v10, %v701_v25  ;;  %v817_v59 = vmul.f32 %v801_v34, %v2918_v18  ;;  %v815_v10 = vmul.f32 %v799_v62, %v2920_v19  ;;  %v795_v25 = vunpack.c.l.bf16 %v3123_v40  ;;  %v2407_v40 = vld [vmem:[#allocation8 + $0x30] sm:$0xff] }
 0x243   :  { %v824_v48 = vpack.c.bf16 %v814_v8, %v813_v11 }
 0x244   :  { %v737_v36 = vmax.f32 %v721_v30, 0.0  ;;  %v825_v6 = vpack.c.bf16 %v816_v1, %v815_v10  ;;  %v811_v9 = vmul.f32 %v795_v25, %v2948_v44 }
 0x246   :  { %v753_v37 = vpack.c.bf16 %v737_v36, %v737_v36  ;;  %v823_v30 = vpack.c.bf16 %v812_v29, %v811_v9  ;;  %v2408_v36 = vld [vmem:[#allocation8 + $0x38] sm:$0xff] }
 0x247   :  { %948 = vmatpush.bf16.msrb.mxu0 %v2408_v36 }
 0x248   :  { %v1028_v39 = vunpack.c.l.b16 %v753_v37  ;;  %v802_v41 = vunpack.c.l.bf16 %v753_v37  ;;  %v2413_v37 = vld [vmem:[#allocation10 + $0x20] sm:$0xff] }
 0x24a   :  { %v1036_v54 = vpack.c.b16 %v1028_v39, %v1027_v38  ;;  %v818_v61 = vmul.f32 %v802_v41, %v2933_v27  ;;  %v2412_v41 = vld [vmem:[#allocation10 + $0x18] sm:$0xff] }
 0x24b   :  { %949 = vmatpush.bf16.msrb.mxu0 %v2407_v40 }
 0x24c   :  { %1136 = vmatmul.bf16.gmra.mxu1 %v1036_v54  ;;  %v826_v0 = vpack.c.bf16 %v818_v61, %v817_v59  ;;  %v2411_v61 = vld [vmem:[#allocation10 + $0x10] sm:$0xff] }
 0x24e   :  { %827 = vmatpush.bf16.msra.mxu3 %v826_v0 }
 0x24f   :  { %950 = vmatpush.bf16.msrb.mxu0 %v2406_v31 }
 0x252   :  { %828 = vmatpush.bf16.msra.mxu3 %v825_v6 }
 0x253   :  { %951 = vmatpush.bf16.msrb.mxu0 %v2405_v57 }
 0x256   :  { %829 = vmatpush.bf16.msra.mxu3 %v824_v48 }
 0x257   :  { %952 = vmatpush.bf16.msrb.mxu0 %v2404_v15 }
 0x259   :  { %v1102_v8 = vpop.f32.mrf.mxu1 }
 0x25a   :  { %830 = vmatpush.bf16.msra.mxu3 %v823_v30 }
 0x25b   :  { %953 = vmatpush.bf16.msrb.mxu0 %v2403_v49 }
 0x25e   :  { %831 = vmatpush.bf16.msra.mxu3 %v822_v33 }
 0x261   :  { %v1104_v25 = vpop.f32.mrf.mxu1 }
 0x262   :  { %832 = vmatpush.bf16.msra.mxu3 %v821_v58 }
 0x266   :  { %833 = vmatpush.bf16.msra.mxu3 %v820_v16 }
 0x269   :  { %v1107_v9 = vpop.f32.mrf.mxu1 }
 0x26a   :  { %834 = vmatpush.bf16.msra.mxu3 %v819_v53 }
 0x26d   :  { %835 = vmatmul.bf16.vlgmr.msra.gmra.mxu3 %v2991_v20  ;;  %v2402_v20 = vld [vmem:[#allocation8 + $0x8] sm:$0xff] }
 0x26e   :  { %954 = vmatpush.bf16.msrb.mxu0 %v2402_v20 }
 0x271   :  { %v1109_v30 = vpop.f32.mrf.mxu1 }
 0x272   :  { %955 = vmatpush.bf16.msrb.mxu0 %v2401_v50 }
 0x279   :  { %v1112_v15 = vpop.f32.mrf.mxu1 }
 0x27d   :  { %840 = vmatmul.bf16.gmra.mxu3 %v2997_v21  ;;  %v2416_v21 = vld [vmem:[#allocation10 + $0x38] sm:$0xff] }
 0x27e   :  { %1253 = vmatpush.bf16.msrb.mxu2 %v2416_v21 }
 0x281   :  { %v1114_v21 = vpop.f32.mrf.mxu1 }
 0x282   :  { %1254 = vmatpush.bf16.msrb.mxu2 %v2415_v14 }
 0x286   :  { %1255 = vmatpush.bf16.msrb.mxu2 %v2414_v32 }
 0x28a   :  { %1256 = vmatpush.bf16.msrb.mxu2 %v2413_v37 }
 0x28d   :  { %845 = vmatmul.bf16.gmra.mxu3 %v3003_v22 }
 0x28e   :  { %1257 = vmatpush.bf16.msrb.mxu2 %v2412_v41 }
 0x292   :  { %1258 = vmatpush.bf16.msrb.mxu2 %v2411_v61 }
 0x296   :  { %1259 = vmatpush.bf16.msrb.mxu2 %v2410_v2 }
 0x29a   :  { %1260 = vmatpush.bf16.msrb.mxu2 %v2409_v60  ;;  %v2421_v60 = vld [vmem:[#allocation11 + $0x20] sm:$0xff] }
 0x29d   :  { %850 = vmatmul.bf16.gmra.mxu3 %v3009_v23 }
 0x2ad   :  { %855 = vmatmul.bf16.gmra.mxu3 %v3015_v26 }
 0x2bd   :  { %860 = vmatmul.bf16.gmra.mxu3 %v3021_v35 }
 0x2cd   :  { %865 = vmatmul.bf16.gmra.mxu3 %v3030_v46 }
 0x2dd   :  { %870 = vmatmul.bf16.gmra.mxu3 %v3039_v51 }
 0x2f0   :  { %v836_v22 = vpop.f32.mrf.mxu3 }
 0x2f1   :  { %v876_v53 = vmul.f32 %v836_v22, %v2982_v12 }
 0x2f8   :  { %v838_v23 = vpop.f32.mrf.mxu3 }
 0x2f9   :  { %v877_v26 = vmul.f32 %v838_v23, %v2984_v13 }
 0x2fb   :  { %v892_v16 = vpack.c.bf16 %v877_v26, %v876_v53 }
 0x2fd   :  { %956 = vmatmul.bf16.vlgmr.msrb.gmra.mxu0 %v892_v16 }
 0x300   :  { %v841_v35 = vpop.f32.mrf.mxu3 }
 0x301   :  { %v878_v58 = vmul.f32 %v841_v35, %v2975_v5 }
 0x308   :  { %v843_v52 = vpop.f32.mrf.mxu3 }
 0x309   :  { %v879_v46 = vmul.f32 %v843_v52, %v2973_v4  ;;  %v2424_v52 = vld [vmem:[#allocation11 + $0x38] sm:$0xff] }
 0x30a   :  { %1682 = vmatpush.bf16.msrb.mxu3 %v2424_v52 }
 0x30b   :  { %v893_v51 = vpack.c.bf16 %v879_v46, %v878_v58  ;;  %v1117_v58 = vpop.f32.mrf.mxu1 }
 0x30d   :  { %961 = vmatmul.bf16.gmra.mxu0 %v893_v51 }
 0x310   :  { %v846_v33 = vpop.f32.mrf.mxu3 }
 0x311   :  { %v880_v12 = vmul.f32 %v846_v33, %v2962_v56 }
 0x313   :  { %v1119_v33 = vpop.f32.mrf.mxu1 }
 0x318   :  { %v848_v42 = vpop.f32.mrf.mxu3 }
 0x319   :  { %v881_v13 = vmul.f32 %v848_v42, %v2970_v63 }
 0x31b   :  { %v894_v7 = vpack.c.bf16 %v881_v13, %v880_v12 }
 0x31d   :  { %966 = vmatmul.bf16.gmra.mxu0 %v894_v7 }
 0x320   :  { %v851_v34 = vpop.f32.mrf.mxu3 }
 0x321   :  { %v882_v5 = vmul.f32 %v851_v34, %v2950_v45 }
 0x328   :  { %v853_v38 = vpop.f32.mrf.mxu3 }
 0x329   :  { %v883_v4 = vmul.f32 %v853_v38, %v2960_v55  ;;  %v2423_v38 = vld [vmem:[#allocation11 + $0x30] sm:$0xff] }
 0x32a   :  { %1683 = vmatpush.bf16.msrb.mxu3 %v2423_v38 }
 0x32b   :  { %v895_v39 = vpack.c.bf16 %v883_v4, %v882_v5 }
 0x32d   :  { %971 = vmatmul.bf16.gmra.mxu0 %v895_v39  ;;  %v1122_v39 = vpop.f32.mrf.mxu1 }
 0x330   :  { %v856_v47 = vpop.f32.mrf.mxu3 }
 0x331   :  { %v884_v56 = vmul.f32 %v856_v47, %v2948_v44 }
 0x338   :  { %v858_v54 = vpop.f32.mrf.mxu3 }
 0x339   :  { %v885_v63 = vmul.f32 %v858_v54, %v2946_v43 }
 0x33b   :  { %v896_v59 = vpack.c.bf16 %v885_v63, %v884_v56 }
 0x33d   :  { %976 = vmatmul.bf16.gmra.mxu0 %v896_v59  ;;  %v1124_v59 = vpop.f32.mrf.mxu1 }
 0x340   :  { %v861_v62 = vpop.f32.mrf.mxu3 }
 0x341   :  { %v886_v45 = vmul.f32 %v861_v62, %v2916_v17 }
 0x345   :  { %v1127_v2 = vpop.f32.mrf.mxu1 }
 0x348   :  { %v863_v0 = vpop.f32.mrf.mxu3 }
 0x349   :  { %v887_v55 = vmul.f32 %v863_v0, %v2928_v24  ;;  %v2422_v0 = vld [vmem:[#allocation11 + $0x28] sm:$0xff] }
 0x34a   :  { %1684 = vmatpush.bf16.msrb.mxu3 %v2422_v0 }
 0x34b   :  { %v897_v1 = vpack.c.bf16 %v887_v55, %v886_v45 }
 0x34d   :  { %981 = vmatmul.bf16.gmra.mxu0 %v897_v1 }
 0x34e   :  { %1685 = vmatpush.bf16.msrb.mxu3 %v2421_v60 }
 0x350   :  { %v866_v10 = vpop.f32.mrf.mxu3 }
 0x351   :  { %v888_v44 = vmul.f32 %v866_v10, %v2920_v19 }
 0x358   :  { %v868_v3 = vpop.f32.mrf.mxu3 }
 0x359   :  { %v889_v43 = vmul.f32 %v868_v3, %v2935_v28  ;;  %v3184_v28 = vld [vmem:[%s3339_s8] ss:$0 sm:$0xff] }
 0x35b   :  { %v898_v6 = vpack.c.bf16 %v889_v43, %v888_v44 }
 0x35d   :  { %986 = vmatmul.bf16.gmra.mxu0 %v898_v6 }
 0x360   :  { %v871_v11 = vpop.f32.mrf.mxu3 }
 0x361   :  { %v890_v24 = vmul.f32 %v871_v11, %v2918_v18 }
 0x368   :  { %v873_v17 = vpop.f32.mrf.mxu3 }
 0x369   :  { %v891_v48 = vmul.f32 %v873_v17, %v2933_v27 }
 0x36b   :  { %v899_v29 = vpack.c.bf16 %v891_v48, %v890_v24 }
 0x36d   :  { %991 = vmatmul.bf16.gmra.mxu0 %v899_v29 }
 0x37a   :  { %v957_v36 = vpop.f32.mrf.mxu0 }
 0x37b   :  { %v1103_v19 = vadd.f32 %v1102_v8, %v957_v36 }
 0x37d   :  { %v1145_v31 = vadd.f32 %v3184_v28, %v1103_v19 }
 0x37f   :  { %v1161_v49 = vmax.f32 %v1145_v31, 0.0  ;;  %v2420_v31 = vld [vmem:[#allocation11 + $0x18] sm:$0xff] }
 0x380   :  { %1686 = vmatpush.bf16.msrb.mxu3 %v2420_v31 }
 0x382   :  { %v959_v40 = vpop.f32.mrf.mxu0 }
 0x383   :  { %v1105_v57 = vadd.f32 %v1104_v25, %v959_v40  ;;  %v1129_v25 = vpop.f32.mrf.mxu1 }
 0x385   :  { %v1146_v18 = vadd.f32 %v3184_v28, %v1105_v57 }
 0x387   :  { %v1162_v27 = vmax.f32 %v1146_v18, 0.0  ;;  %v2419_v18 = vld [vmem:[#allocation11 + $0x10] sm:$0xff] }
 0x388   :  { %1687 = vmatpush.bf16.msrb.mxu3 %v2419_v18 }
 0x389   :  { %v1177_v20 = vpack.c.bf16 %v1162_v27, %v1161_v49 }
 0x38a   :  { %v962_v50 = vpop.f32.mrf.mxu0 }
 0x38b   :  { %1261 = vmatmul.bf16.vlgmr.msrb.gmra.mxu2 %v1177_v20  ;;  %v1108_v22 = vadd.f32 %v1107_v9, %v962_v50 }
 0x38d   :  { %v1147_v53 = vadd.f32 %v3184_v28, %v1108_v22 }
 0x38f   :  { %v1163_v16 = vmax.f32 %v1147_v53, 0.0 }
 0x392   :  { %v964_v23 = vpop.f32.mrf.mxu0 }
 0x393   :  { %v1110_v26 = vadd.f32 %v1109_v30, %v964_v23  ;;  %v1132_v30 = vpop.f32.mrf.mxu1 }
 0x395   :  { %v1148_v14 = vadd.f32 %v3184_v28, %v1110_v26 }
 0x397   :  { %v1164_v35 = vmax.f32 %v1148_v14, 0.0 }
 0x399   :  { %v1178_v46 = vpack.c.bf16 %v1164_v35, %v1163_v16 }
 0x39a   :  { %v967_v32 = vpop.f32.mrf.mxu0 }
 0x39b   :  { %1266 = vmatmul.bf16.gmra.mxu2 %v1178_v46  ;;  %v1113_v51 = vadd.f32 %v1112_v15, %v967_v32  ;;  %v1134_v49 = vpop.f32.mrf.mxu1 }
 0x39d   :  { %v1149_v12 = vadd.f32 %v3184_v28, %v1113_v51 }
 0x39f   :  { %v1165_v37 = vmax.f32 %v1149_v12, 0.0 }
 0x3a2   :  { %v969_v42 = vpop.f32.mrf.mxu0 }
 0x3a3   :  { %v1115_v13 = vadd.f32 %v1114_v21, %v969_v42  ;;  %v1137_v26 = vpop.f32.mrf.mxu1 }
 0x3a5   :  { %v1150_v7 = vadd.f32 %v3184_v28, %v1115_v13  ;;  %v3205_v13 = vld [vmem:[%s3341_s10] ss:$0 sm:$0xff] }
 0x3a7   :  { %v1166_v34 = vmax.f32 %v1150_v7, 0.0  ;;  %v2418_v7 = vld [vmem:[#allocation11 + $0x8] sm:$0xff] }
 0x3a8   :  { %1688 = vmatpush.bf16.msrb.mxu3 %v2418_v7 }
 0x3a9   :  { %v1179_v5 = vpack.c.bf16 %v1166_v34, %v1165_v37 }
 0x3aa   :  { %v972_v4 = vpop.f32.mrf.mxu0 }
 0x3ab   :  { %1271 = vmatmul.bf16.gmra.mxu2 %v1179_v5  ;;  %v1118_v41 = vadd.f32 %v1117_v58, %v972_v4  ;;  %v1139_v52 = vpop.f32.mrf.mxu1  ;;  %v2417_v5 = vld [vmem:[#allocation11] sm:$0xff] }
 0x3ac   :  { %1689 = vmatpush.bf16.msrb.mxu3 %v2417_v5 }
 0x3ad   :  { %v1151_v54 = vadd.f32 %v3184_v28, %v1118_v41 }
 0x3af   :  { %v1167_v61 = vmax.f32 %v1151_v54, 0.0 }
 0x3b2   :  { %v974_v47 = vpop.f32.mrf.mxu0 }
 0x3b3   :  { %v1120_v56 = vadd.f32 %v1119_v33, %v974_v47 }
 0x3b5   :  { %v1152_v63 = vadd.f32 %v3184_v28, %v1120_v56 }
 0x3b7   :  { %v1168_v62 = vmax.f32 %v1152_v63, 0.0 }
 0x3b9   :  { %v1180_v45 = vpack.c.bf16 %v1168_v62, %v1167_v61 }
 0x3ba   :  { %v977_v55 = vpop.f32.mrf.mxu0 }
 0x3bb   :  { %1276 = vmatmul.bf16.gmra.mxu2 %v1180_v45  ;;  %v1123_v1 = vadd.f32 %v1122_v39, %v977_v55 }
 0x3bd   :  { %v1153_v3 = vadd.f32 %v3184_v28, %v1123_v1 }
 0x3bf   :  { %v1169_v6 = vmax.f32 %v1153_v3, 0.0 }
 0x3c2   :  { %v979_v10 = vpop.f32.mrf.mxu0 }
 0x3c3   :  { %v1125_v44 = vadd.f32 %v1124_v59, %v979_v10 }
 0x3c5   :  { %v1154_v43 = vadd.f32 %v3184_v28, %v1125_v44 }
 0x3c7   :  { %v1170_v8 = vmax.f32 %v1154_v43, 0.0 }
 0x3c9   :  { %v1181_v11 = vpack.c.bf16 %v1170_v8, %v1169_v6 }
 0x3ca   :  { %v982_v17 = vpop.f32.mrf.mxu0 }
 0x3cb   :  { %1281 = vmatmul.bf16.gmra.mxu2 %v1181_v11  ;;  %v1128_v24 = vadd.f32 %v1127_v2, %v982_v17 }
 0x3cd   :  { %v1155_v29 = vadd.f32 %v3184_v28, %v1128_v24 }
 0x3cf   :  { %v1171_v19 = vmax.f32 %v1155_v29, 0.0 }
 0x3d2   :  { %v984_v48 = vpop.f32.mrf.mxu0 }
 0x3d3   :  { %v1130_v9 = vadd.f32 %v1129_v25, %v984_v48 }
 0x3d5   :  { %v1156_v36 = vadd.f32 %v3184_v28, %v1130_v9 }
 0x3d7   :  { %v1172_v40 = vmax.f32 %v1156_v36, 0.0 }
 0x3d9   :  { %v1182_v57 = vpack.c.bf16 %v1172_v40, %v1171_v19 }
 0x3da   :  { %v987_v15 = vpop.f32.mrf.mxu0 }
 0x3db   :  { %1286 = vmatmul.bf16.gmra.mxu2 %v1182_v57  ;;  %v1133_v27 = vadd.f32 %v1132_v30, %v987_v15 }
 0x3dd   :  { %v1157_v50 = vadd.f32 %v3184_v28, %v1133_v27 }
 0x3df   :  { %v1173_v23 = vmax.f32 %v1157_v50, 0.0 }
 0x3e2   :  { %v989_v20 = vpop.f32.mrf.mxu0 }
 0x3e3   :  { %v1135_v21 = vadd.f32 %v1134_v49, %v989_v20 }
 0x3e5   :  { %v1158_v22 = vadd.f32 %v3184_v28, %v1135_v21 }
 0x3e7   :  { %v1174_v53 = vmax.f32 %v1158_v22, 0.0 }
 0x3e9   :  { %v1183_v14 = vpack.c.bf16 %v1174_v53, %v1173_v23 }
 0x3ea   :  { %v992_v16 = vpop.f32.mrf.mxu0 }
 0x3eb   :  { %1291 = vmatmul.bf16.gmra.mxu2 %v1183_v14  ;;  %v1138_v35 = vadd.f32 %v1137_v26, %v992_v16 }
 0x3ed   :  { %v1159_v46 = vadd.f32 %v3184_v28, %v1138_v35 }
 0x3ef   :  { %v1175_v33 = vmax.f32 %v1159_v46, 0.0 }
 0x3f2   :  { %v994_v58 = vpop.f32.mrf.mxu0 }
 0x3f3   :  { %v1140_v32 = vadd.f32 %v1139_v52, %v994_v58 }
 0x3f5   :  { %v1160_v51 = vadd.f32 %v3184_v28, %v1140_v32 }
 0x3f7   :  { %v1176_v42 = vmax.f32 %v1160_v51, 0.0 }
 0x3f9   :  { %v1184_v12 = vpack.c.bf16 %v1176_v42, %v1175_v33 }
 0x3fb   :  { %1296 = vmatmul.bf16.gmra.mxu2 %v1184_v12 }
 0x40e   :  { %v1262_v37 = vpop.f32.mrf.mxu2 }
 0x40f   :  { %v1263_v34 = vadd.f32 %v3205_v13, %v1262_v37 }
 0x411   :  { %v2297_v38 = vmul.f32 -1.442695, %v1263_v34 }
 0x413   :  { %2444 = vpow2.f32 %v2297_v38 }
 0x416   :  { %v1264_v4 = vpop.f32.mrf.mxu2 }
 0x417   :  { %v1265_v28 = vadd.f32 %v3205_v13, %v1264_v4 }
 0x419   :  { %v2445_v39 = vpop.eup %2444  ;;  %v2298_v41 = vmul.f32 -1.442695, %v1265_v28 }
 0x41a   :  { %v1350_v47 = vadd.f32 1.0, %v2445_v39 }
 0x41b   :  { %2446 = vpow2.f32 %v2298_v41 }
 0x41c   :  { %2448 = vrcp.f32 %v1350_v47  ;;  %vm1371_vm1 = vweird.f32 %v1350_v47  ;;  %v1375_v25 = vand.u32 2147483647, %v1350_v47  ;;  %v1377_v17 = vand.u32 2147483648, %v1350_v47 }
 0x41e   :  { %v1267_v54 = vpop.f32.mrf.mxu2  ;;  %vm1376_vm5 = vcmp.eq.f32.partialorder %v1375_v25, 8.507059e+37  ;;  %v1378_v18 = vor.u32 1.1754944e-38, %v1377_v17 }
 0x41f   :  { %v1268_v56 = vadd.f32 %v3205_v13, %v1267_v54 }
 0x421   :  { %v2447_v63 = vpop.eup %2446  ;;  %v2299_v59 = vmul.f32 -1.442695, %v1268_v56 }
 0x422   :  { %v2449_v61 = vpop.eup %2448  ;;  %v1351_v62 = vadd.f32 1.0, %v2447_v63 }
 0x423   :  { %v1367_v0 = vmul.f32 %v2449_v61, %v1350_v47  ;;  %2450 = vpow2.f32 %v2299_v59  ;;  %vm1372_vm0 = vweird.f32 %v2449_v61 }
 0x424   :  { %2452 = vrcp.f32 %v1351_v62  ;;  %v1392_v24 = vand.u32 2147483648, %v1351_v62  ;;  %v1390_v9 = vand.u32 2147483647, %v1351_v62  ;;  %vm3215_vm3 = vmor %vm1371_vm1, %vm1372_vm0  ;;  %vm1386_vm4 = vweird.f32 %v1351_v62 }
 0x425   :  { %v1368_v45 = vsub.f32 1.0, %v1367_v0 }
 0x426   :  { %v1269_v55 = vpop.f32.mrf.mxu2  ;;  %v1393_v49 = vor.u32 1.1754944e-38, %v1392_v24  ;;  %vm1391_vm7 = vcmp.eq.f32.partialorder %v1390_v9, 8.507059e+37 }
 0x427   :  { %v1270_v1 = vadd.f32 %v3205_v13, %v1269_v55  ;;  %v1369_v3 = vmul.f32 %v2449_v61, %v1368_v45 }
 0x429   :  { %v2451_v2 = vpop.eup %2450  ;;  %v2300_v10 = vmul.f32 -1.442695, %v1270_v1  ;;  %v1370_v8 = vadd.f32 %v2449_v61, %v1369_v3 }
 0x42a   :  { %v2453_v44 = vpop.eup %2452  ;;  %v3211_v43 = vadd.f32 1.0, %v2451_v2 }
 0x42b   :  { %v1382_v6 = vmul.f32 %v2453_v44, %v1351_v62  ;;  %2454 = vpow2.f32 %v2300_v10  ;;  %vm1387_vm2 = vweird.f32 %v2453_v44  ;;  %v1374_v40 = vsel %vm3215_vm3, %v2449_v61, %v1370_v8 }
 0x42c   :  { %2456 = vrcp.f32 %v3211_v43  ;;  %vm1388_vm6 = vmor %vm1386_vm4, %vm1387_vm2  ;;  %v1379_v50 = vsel %vm1376_vm5, %v1378_v18, %v1374_v40  ;;  %vm1401_vm9 = vweird.f32 %v3211_v43  ;;  %v1405_v42 = vand.u32 2147483647, %v3211_v43 }
 0x42d   :  { %v1383_v60 = vsub.f32 1.0, %v1382_v6  ;;  %v1407_v12 = vand.u32 2147483648, %v3211_v43 }
 0x42e   :  { %v1272_v11 = vpop.f32.mrf.mxu2  ;;  %vm1406_vm13 = vcmp.eq.f32.partialorder %v1405_v42, 8.507059e+37 }
 0x42f   :  { %v1273_v48 = vadd.f32 %v3205_v13, %v1272_v11  ;;  %v1384_v29 = vmul.f32 %v2453_v44, %v1383_v60  ;;  %v1408_v56 = vor.u32 1.1754944e-38, %v1407_v12 }
 0x431   :  { %v2455_v36 = vpop.eup %2454  ;;  %v2301_v19 = vmul.f32 -1.442695, %v1273_v48  ;;  %v1385_v31 = vadd.f32 %v2453_v44, %v1384_v29 }
 0x432   :  { %v2457_v57 = vpop.eup %2456  ;;  %v1353_v15 = vadd.f32 1.0, %v2455_v36 }
 0x433   :  { %2458 = vpow2.f32 %v2301_v19  ;;  %v1389_v27 = vsel %vm1388_vm6, %v2453_v44, %v1385_v31  ;;  %v1397_v20 = vmul.f32 %v2457_v57, %v3211_v43  ;;  %vm1402_vm8 = vweird.f32 %v2457_v57 }
 0x434   :  { %2460 = vrcp.f32 %v1353_v15  ;;  %v1394_v21 = vsel %vm1391_vm7, %v1393_v49, %v1389_v27  ;;  %v1422_v7 = vand.u32 2147483648, %v1353_v15  ;;  %v1420_v38 = vand.u32 2147483647, %v1353_v15  ;;  %vm3230_vm11 = vmor %vm1401_vm9, %vm1402_vm8 }
 0x435   :  { %v1606_v22 = vpack.c.bf16 %v1394_v21, %v1379_v50  ;;  %v1398_v23 = vsub.f32 1.0, %v1397_v20  ;;  %vm1416_vm12 = vweird.f32 %v1353_v15 }
 0x436   :  { %v1274_v53 = vpop.f32.mrf.mxu2  ;;  %v1423_v63 = vor.u32 1.1754944e-38, %v1422_v7  ;;  %vm1421_vm15 = vcmp.eq.f32.partialorder %v1420_v38, 8.507059e+37 }
 0x437   :  { %v1275_v26 = vadd.f32 %v3205_v13, %v1274_v53  ;;  %1690 = vmatmul.bf16.vlgmr.msrb.gmra.mxu3 %v1606_v22  ;;  %v1399_v35 = vmul.f32 %v2457_v57, %v1398_v23 }
 0x439   :  { %v2459_v14 = vpop.eup %2458  ;;  %v2302_v16 = vmul.f32 -1.442695, %v1275_v26  ;;  %v1400_v32 = vadd.f32 %v2457_v57, %v1399_v35 }
 0x43a   :  { %v2461_v52 = vpop.eup %2460  ;;  %v3223_v58 = vadd.f32 1.0, %v2459_v14 }
 0x43b   :  { %2462 = vpow2.f32 %v2302_v16  ;;  %v1412_v46 = vmul.f32 %v2461_v52, %v1353_v15  ;;  %vm1417_vm10 = vweird.f32 %v2461_v52  ;;  %v1404_v39 = vsel %vm3230_vm11, %v2457_v57, %v1400_v32 }
 0x43c   :  { %2464 = vrcp.f32 %v3223_v58  ;;  %vm1418_vm14 = vmor %vm1416_vm12, %vm1417_vm10  ;;  %v1409_v62 = vsel %vm1406_vm13, %v1408_v56, %v1404_v39  ;;  %vm1431_vm1 = vweird.f32 %v3223_v58  ;;  %v1435_v17 = vand.u32 2147483647, %v3223_v58 }
 0x43d   :  { %v1413_v51 = vsub.f32 1.0, %v1412_v46  ;;  %v1437_v24 = vand.u32 2147483648, %v3223_v58 }
 0x43e   :  { %v1277_v33 = vpop.f32.mrf.mxu2  ;;  %vm1436_vm5 = vcmp.eq.f32.partialorder %v1435_v17, 8.507059e+37 }
 0x43f   :  { %v1278_v37 = vadd.f32 %v3205_v13, %v1277_v33  ;;  %v1414_v34 = vmul.f32 %v2461_v52, %v1413_v51  ;;  %v1438_v49 = vor.u32 1.1754944e-38, %v1437_v24 }
 0x441   :  { %v2463_v4 = vpop.eup %2462  ;;  %v2303_v28 = vmul.f32 -1.442695, %v1278_v37  ;;  %v1415_v41 = vadd.f32 %v2461_v52, %v1414_v34 }
 0x442   :  { %v2465_v47 = vpop.eup %2464  ;;  %v1355_v54 = vadd.f32 1.0, %v2463_v4 }
 0x443   :  { %2466 = vpow2.f32 %v2303_v28  ;;  %v1419_v59 = vsel %vm1418_vm14, %v2461_v52, %v1415_v41  ;;  %v1427_v61 = vmul.f32 %v2465_v47, %v3223_v58  ;;  %vm1432_vm0 = vweird.f32 %v2465_v47 }
 0x444   :  { %2468 = vrcp.f32 %v1355_v54  ;;  %v1424_v0 = vsel %vm1421_vm15, %v1423_v63, %v1419_v59  ;;  %v1452_v48 = vand.u32 2147483648, %v1355_v54  ;;  %v1450_v30 = vand.u32 2147483647, %v1355_v54  ;;  %vm3245_vm3 = vmor %vm1431_vm1, %vm1432_vm0 }
 0x445   :  { %v1607_v45 = vpack.c.bf16 %v1424_v0, %v1409_v62  ;;  %v1428_v55 = vsub.f32 1.0, %v1427_v61  ;;  %vm1446_vm4 = vweird.f32 %v1355_v54 }
 0x446   :  { %v1279_v1 = vpop.f32.mrf.mxu2  ;;  %v1453_v27 = vor.u32 1.1754944e-38, %v1452_v48  ;;  %vm1451_vm7 = vcmp.eq.f32.partialorder %v1450_v30, 8.507059e+37 }
 0x447   :  { %v1280_v2 = vadd.f32 %v3205_v13, %v1279_v1  ;;  %1695 = vmatmul.bf16.gmra.mxu3 %v1607_v45  ;;  %v1429_v44 = vmul.f32 %v2465_v47, %v1428_v55 }
 0x449   :  { %v2467_v10 = vpop.eup %2466  ;;  %v2304_v3 = vmul.f32 -1.442695, %v1280_v2  ;;  %v1430_v60 = vadd.f32 %v2465_v47, %v1429_v44 }
 0x44a   :  { %v2469_v43 = vpop.eup %2468  ;;  %v3238_v6 = vadd.f32 1.0, %v2467_v10 }
 0x44b   :  { %2470 = vpow2.f32 %v2304_v3  ;;  %v1442_v8 = vmul.f32 %v2469_v43, %v1355_v54  ;;  %vm1447_vm2 = vweird.f32 %v2469_v43  ;;  %v1434_v31 = vsel %vm3245_vm3, %v2465_v47, %v1430_v60 }
 0x44c   :  { %2472 = vrcp.f32 %v3238_v6  ;;  %vm1448_vm6 = vmor %vm1446_vm4, %vm1447_vm2  ;;  %v1439_v21 = vsel %vm1436_vm5, %v1438_v49, %v1434_v31  ;;  %vm1461_vm9 = vweird.f32 %v3238_v6  ;;  %v1465_v12 = vand.u32 2147483647, %v3238_v6 }
 0x44d   :  { %v1443_v11 = vsub.f32 1.0, %v1442_v8  ;;  %v1467_v7 = vand.u32 2147483648, %v3238_v6 }
 0x44e   :  { %v1282_v25 = vpop.f32.mrf.mxu2  ;;  %vm1466_vm13 = vcmp.eq.f32.partialorder %v1465_v12, 8.507059e+37 }
 0x44f   :  { %v1283_v29 = vadd.f32 %v3205_v13, %v1282_v25  ;;  %v1444_v9 = vmul.f32 %v2469_v43, %v1443_v11  ;;  %v1468_v63 = vor.u32 1.1754944e-38, %v1467_v7 }
 0x451   :  { %v2471_v19 = vpop.eup %2470  ;;  %v2305_v40 = vmul.f32 -1.442695, %v1283_v29  ;;  %v1445_v57 = vadd.f32 %v2469_v43, %v1444_v9 }
 0x452   :  { %v2473_v15 = vpop.eup %2472  ;;  %v1357_v18 = vadd.f32 1.0, %v2471_v19 }
 0x453   :  { %2474 = vpow2.f32 %v2305_v40  ;;  %v1449_v20 = vsel %vm1448_vm6, %v2469_v43, %v1445_v57  ;;  %v1457_v50 = vmul.f32 %v2473_v15, %v3238_v6  ;;  %vm1462_vm8 = vweird.f32 %v2473_v15 }
 0x454   :  { %2476 = vrcp.f32 %v1357_v18  ;;  %v1454_v22 = vsel %vm1451_vm7, %v1453_v27, %v1449_v20  ;;  %v1482_v37 = vand.u32 2147483648, %v1357_v18  ;;  %v1480_v5 = vand.u32 2147483647, %v1357_v18  ;;  %vm3260_vm11 = vmor %vm1461_vm9, %vm1462_vm8 }
 0x455   :  { %v1608_v23 = vpack.c.bf16 %v1454_v22, %v1439_v21  ;;  %v1458_v53 = vsub.f32 1.0, %v1457_v50  ;;  %vm1476_vm12 = vweird.f32 %v1357_v18 }
 0x456   :  { %v1284_v26 = vpop.f32.mrf.mxu2  ;;  %v1483_v59 = vor.u32 1.1754944e-38, %v1482_v37  ;;  %vm1481_vm15 = vcmp.eq.f32.partialorder %v1480_v5, 8.507059e+37 }
 0x457   :  { %v1285_v14 = vadd.f32 %v3205_v13, %v1284_v26  ;;  %1700 = vmatmul.bf16.gmra.mxu3 %v1608_v23  ;;  %v1459_v52 = vmul.f32 %v2473_v15, %v1458_v53 }
 0x459   :  { %v2475_v16 = vpop.eup %2474  ;;  %v2306_v35 = vmul.f32 -1.442695, %v1285_v14  ;;  %v1460_v51 = vadd.f32 %v2473_v15, %v1459_v52 }
 0x45a   :  { %v2477_v58 = vpop.eup %2476  ;;  %v3253_v46 = vadd.f32 1.0, %v2475_v16 }
 0x45b   :  { %2478 = vpow2.f32 %v2306_v35  ;;  %v1472_v32 = vmul.f32 %v2477_v58, %v1357_v18  ;;  %vm1477_vm10 = vweird.f32 %v2477_v58  ;;  %v1464_v41 = vsel %vm3260_vm11, %v2473_v15, %v1460_v51 }
 0x45c   :  { %2480 = vrcp.f32 %v3253_v46  ;;  %vm1478_vm14 = vmor %vm1476_vm12, %vm1477_vm10  ;;  %v1469_v0 = vsel %vm1466_vm13, %v1468_v63, %v1464_v41  ;;  %vm1491_vm1 = vweird.f32 %v3253_v46  ;;  %v1495_v24 = vand.u32 2147483647, %v3253_v46 }
 0x45d   :  { %v1473_v33 = vsub.f32 1.0, %v1472_v32  ;;  %v1497_v48 = vand.u32 2147483648, %v3253_v46 }
 0x45e   :  { %v1287_v42 = vpop.f32.mrf.mxu2  ;;  %vm1496_vm5 = vcmp.eq.f32.partialorder %v1495_v24, 8.507059e+37 }
 0x45f   :  { %v1288_v34 = vadd.f32 %v3205_v13, %v1287_v42  ;;  %v1474_v38 = vmul.f32 %v2477_v58, %v1473_v33  ;;  %v1498_v27 = vor.u32 1.1754944e-38, %v1497_v48 }
 0x461   :  { %v2479_v28 = vpop.eup %2478  ;;  %v2307_v39 = vmul.f32 -1.442695, %v1288_v34  ;;  %v1475_v47 = vadd.f32 %v2477_v58, %v1474_v38 }
 0x462   :  { %v2481_v54 = vpop.eup %2480  ;;  %v1359_v56 = vadd.f32 1.0, %v2479_v28 }
 0x463   :  { %v1487_v61 = vmul.f32 %v2481_v54, %v3253_v46  ;;  %2482 = vpow2.f32 %v2307_v39  ;;  %v1479_v62 = vsel %vm1478_vm14, %v2477_v58, %v1475_v47  ;;  %vm1492_vm0 = vweird.f32 %v2481_v54 }
 0x464   :  { %2484 = vrcp.f32 %v1359_v56  ;;  %v1484_v45 = vsel %vm1481_vm15, %v1483_v59, %v1479_v62  ;;  %v1512_v29 = vand.u32 2147483648, %v1359_v56  ;;  %v1510_v36 = vand.u32 2147483647, %v1359_v56  ;;  %vm3275_vm3 = vmor %vm1491_vm1, %vm1492_vm0 }
 0x465   :  { %v1609_v55 = vpack.c.bf16 %v1484_v45, %v1469_v0  ;;  %v1488_v1 = vsub.f32 1.0, %v1487_v61  ;;  %vm1506_vm4 = vweird.f32 %v1359_v56 }
 0x466   :  { %v1289_v2 = vpop.f32.mrf.mxu2  ;;  %v1513_v20 = vor.u32 1.1754944e-38, %v1512_v29  ;;  %vm1511_vm7 = vcmp.eq.f32.partialorder %v1510_v36, 8.507059e+37 }
 0x467   :  { %v1290_v10 = vadd.f32 %v3205_v13, %v1289_v2  ;;  %1705 = vmatmul.bf16.gmra.mxu3 %v1609_v55  ;;  %v1489_v43 = vmul.f32 %v2481_v54, %v1488_v1 }
 0x469   :  { %v2483_v3 = vpop.eup %2482  ;;  %v2308_v44 = vmul.f32 -1.442695, %v1290_v10  ;;  %v1490_v11 = vadd.f32 %v2481_v54, %v1489_v43 }
 0x46a   :  { %v2485_v6 = vpop.eup %2484  ;;  %v3268_v8 = vadd.f32 1.0, %v2483_v3 }
 0x46b   :  { %v1502_v60 = vmul.f32 %v2485_v6, %v1359_v56  ;;  %2486 = vpow2.f32 %v2308_v44  ;;  %vm1507_vm2 = vweird.f32 %v2485_v6  ;;  %v1494_v57 = vsel %vm3275_vm3, %v2481_v54, %v1490_v11 }
 0x46c   :  { %2488 = vrcp.f32 %v3268_v8  ;;  %vm1508_vm6 = vmor %vm1506_vm4, %vm1507_vm2  ;;  %v1499_v22 = vsel %vm1496_vm5, %v1498_v27, %v1494_v57  ;;  %vm1521_vm9 = vweird.f32 %v3268_v8  ;;  %v1525_v7 = vand.u32 2147483647, %v3268_v8 }
 0x46d   :  { %v1503_v25 = vsub.f32 1.0, %v1502_v60  ;;  %v1527_v37 = vand.u32 2147483648, %v3268_v8 }
 0x46e   :  { %v1292_v17 = vpop.f32.mrf.mxu2  ;;  %vm1526_vm13 = vcmp.eq.f32.partialorder %v1525_v7, 8.507059e+37 }
 0x46f   :  { %v1293_v9 = vadd.f32 %v3205_v13, %v1292_v17  ;;  %v1504_v30 = vmul.f32 %v2485_v6, %v1503_v25  ;;  %v1528_v59 = vor.u32 1.1754944e-38, %v1527_v37 }
 0x471   :  { %v2487_v40 = vpop.eup %2486  ;;  %v2309_v31 = vmul.f32 -1.442695, %v1293_v9  ;;  %v1505_v15 = vadd.f32 %v2485_v6, %v1504_v30 }
 0x472   :  { %v2489_v18 = vpop.eup %2488  ;;  %v1361_v49 = vadd.f32 1.0, %v2487_v40 }
 0x473   :  { %v1517_v50 = vmul.f32 %v2489_v18, %v3268_v8  ;;  %2490 = vpow2.f32 %v2309_v31  ;;  %v1509_v21 = vsel %vm1508_vm6, %v2485_v6, %v1505_v15  ;;  %vm1522_vm8 = vweird.f32 %v2489_v18 }
 0x474   :  { %2492 = vrcp.f32 %v1361_v49  ;;  %v1514_v23 = vsel %vm1511_vm7, %v1513_v20, %v1509_v21  ;;  %v1542_v34 = vand.u32 2147483648, %v1361_v49  ;;  %v1540_v4 = vand.u32 2147483647, %v1361_v49  ;;  %vm3290_vm11 = vmor %vm1521_vm9, %vm1522_vm8 }
 0x475   :  { %v1610_v53 = vpack.c.bf16 %v1514_v23, %v1499_v22  ;;  %v1518_v26 = vsub.f32 1.0, %v1517_v50  ;;  %vm1536_vm12 = vweird.f32 %v1361_v49 }
 0x476   :  { %v1294_v14 = vpop.f32.mrf.mxu2  ;;  %v1543_v61 = vor.u32 1.1754944e-38, %v1542_v34  ;;  %vm1541_vm15 = vcmp.eq.f32.partialorder %v1540_v4, 8.507059e+37 }
 0x477   :  { %v1295_v16 = vadd.f32 %v3205_v13, %v1294_v14  ;;  %1710 = vmatmul.bf16.gmra.mxu3 %v1610_v53  ;;  %v1519_v58 = vmul.f32 %v2489_v18, %v1518_v26 }
 0x479   :  { %v2491_v35 = vpop.eup %2490  ;;  %v2310_v52 = vmul.f32 -1.442695, %v1295_v16  ;;  %v1520_v33 = vadd.f32 %v2489_v18, %v1519_v58 }
 0x47a   :  { %v2493_v46 = vpop.eup %2492  ;;  %v3283_v32 = vadd.f32 1.0, %v2491_v35 }
 0x47b   :  { %v1532_v51 = vmul.f32 %v2493_v46, %v1361_v49  ;;  %2494 = vpow2.f32 %v2310_v52  ;;  %vm1537_vm10 = vweird.f32 %v2493_v46  ;;  %v1524_v47 = vsel %vm3290_vm11, %v2489_v18, %v1520_v33 }
 0x47c   :  { %2496 = vrcp.f32 %v3283_v32  ;;  %vm1538_vm14 = vmor %vm1536_vm12, %vm1537_vm10  ;;  %v1529_v45 = vsel %vm1526_vm13, %v1528_v59, %v1524_v47  ;;  %vm1551_vm1 = vweird.f32 %v3283_v32  ;;  %v1557_v24 = vand.u32 2147483648, %v3283_v32 }
 0x47d   :  { %v1533_v42 = vsub.f32 1.0, %v1532_v51  ;;  %v1555_v29 = vand.u32 2147483647, %v3283_v32 }
 0x47e   :  { %v1297_v12 = vpop.f32.mrf.mxu2  ;;  %v1558_v15 = vor.u32 1.1754944e-38, %v1557_v24 }
 0x47f   :  { %v1298_v38 = vadd.f32 %v3205_v13, %v1297_v12  ;;  %v1534_v5 = vmul.f32 %v2493_v46, %v1533_v42  ;;  %vm1556_vm6 = vcmp.eq.f32.partialorder %v1555_v29, 8.507059e+37 }
 0x481   :  { %v2495_v39 = vpop.eup %2494  ;;  %v2311_v41 = vmul.f32 -1.442695, %v1298_v38  ;;  %v1535_v54 = vadd.f32 %v2493_v46, %v1534_v5  ;;  %v3310_v5 = vld [vmem:[%s3343_s12] ss:$0 sm:$0xff]  ;;  %s2759_s12 = smov [#allocation13]  }
 0x482   :  { %v2497_v56 = vpop.eup %2496  ;;  %v1363_v63 = vadd.f32 1.0, %v2495_v39  ;;  %s2055_s3 = sshll.u32 %s2759_s12, 4  ;;  %s2056_s3 = int_to_ptr.vmem [resolvable:$true] %s2055_s3 }
 0x483   :  { %v1547_v62 = vmul.f32 %v2497_v56, %v3283_v32  ;;  %2498 = vpow2.f32 %v2311_v41  ;;  %v1539_v0 = vsel %vm1538_vm14, %v2493_v46, %v1535_v54  ;;  %vm1552_vm0 = vweird.f32 %v2497_v56 }
 0x484   :  { %2500 = vrcp.f32 %v1363_v63  ;;  %v1544_v55 = vsel %vm1541_vm15, %v1543_v61, %v1539_v0  ;;  %v1572_v48 = vand.u32 2147483648, %v1363_v63  ;;  %v1570_v9 = vand.u32 2147483647, %v1363_v63  ;;  %vm3301_vm3 = vmor %vm1551_vm1, %vm1552_vm0 }
 0x485   :  { %v1611_v1 = vpack.c.bf16 %v1544_v55, %v1529_v45  ;;  %v1548_v2 = vsub.f32 1.0, %v1547_v62  ;;  %vm1566_vm4 = vweird.f32 %v1363_v63 }
 0x486   :  { %v1299_v10 = vpop.f32.mrf.mxu2  ;;  %v1573_v18 = vor.u32 1.1754944e-38, %v1572_v48  ;;  %vm1571_vm7 = vcmp.eq.f32.partialorder %v1570_v9, 8.507059e+37 }
 0x487   :  { %v1300_v3 = vadd.f32 %v3205_v13, %v1299_v10  ;;  %1715 = vmatmul.bf16.gmra.mxu3 %v1611_v1  ;;  %v1549_v6 = vmul.f32 %v2497_v56, %v1548_v2 }
 0x489   :  { %v2499_v44 = vpop.eup %2498  ;;  %v2312_v43 = vmul.f32 -1.442695, %v1300_v3  ;;  %v1550_v25 = vadd.f32 %v2497_v56, %v1549_v6 }
 0x48a   :  { %v2501_v8 = vpop.eup %2500  ;;  %v1364_v60 = vadd.f32 1.0, %v2499_v44 }
 0x48b   :  { %v1562_v11 = vmul.f32 %v2501_v8, %v1363_v63  ;;  %2502 = vpow2.f32 %v2312_v43  ;;  %vm1567_vm2 = vweird.f32 %v2501_v8  ;;  %v1554_v19 = vsel %vm3301_vm3, %v2497_v56, %v1550_v25 }
 0x48c   :  { %2504 = vrcp.f32 %v1364_v60  ;;  %vm1568_vm5 = vmor %vm1566_vm4, %vm1567_vm2  ;;  %v1559_v20 = vsel %vm1556_vm6, %v1558_v15, %v1554_v19  ;;  %vm1581_vm9 = vweird.f32 %v1364_v60  ;;  %v1587_v35 = vand.u32 2147483648, %v1364_v60 }
 0x48d   :  { %v1563_v17 = vsub.f32 1.0, %v1562_v11  ;;  %v1585_v58 = vand.u32 2147483647, %v1364_v60 }
 0x48e   :  { %v1588_v42 = vor.u32 1.1754944e-38, %v1587_v35 }
 0x48f   :  { %v1564_v13 = vmul.f32 %v2501_v8, %v1563_v17  ;;  %vm1586_vm14 = vcmp.eq.f32.partialorder %v1585_v58, 8.507059e+37 }
 0x491   :  { %v2503_v36 = vpop.eup %2502  ;;  %v1565_v40 = vadd.f32 %v2501_v8, %v1564_v13 }
 0x492   :  { %v2505_v31 = vpop.eup %2504  ;;  %v1365_v57 = vadd.f32 1.0, %v2503_v36 }
 0x493   :  { %v1577_v49 = vmul.f32 %v2505_v31, %v1364_v60  ;;  %v1569_v27 = vsel %vm1568_vm5, %v2501_v8, %v1565_v40  ;;  %vm1582_vm8 = vweird.f32 %v2505_v31 }
 0x494   :  { %2506 = vrcp.f32 %v1365_v57  ;;  %v1574_v50 = vsel %vm1571_vm7, %v1573_v18, %v1569_v27  ;;  %v1602_v52 = vand.u32 2147483648, %v1365_v57  ;;  %v1600_v32 = vand.u32 2147483647, %v1365_v57  ;;  %vm1583_vm11 = vmor %vm1581_vm9, %vm1582_vm8 }
 0x495   :  { %v1612_v21 = vpack.c.bf16 %v1574_v50, %v1559_v20  ;;  %v1578_v22 = vsub.f32 1.0, %v1577_v49  ;;  %vm1596_vm12 = vweird.f32 %v1365_v57 }
 0x496   :  { %v1603_v12 = vor.u32 1.1754944e-38, %v1602_v52  ;;  %vm1601_vm15 = vcmp.eq.f32.partialorder %v1600_v32, 8.507059e+37 }
 0x497   :  { %1720 = vmatmul.bf16.gmra.mxu3 %v1612_v21  ;;  %v1579_v23 = vmul.f32 %v2505_v31, %v1578_v22 }
 0x499   :  { %v1580_v14 = vadd.f32 %v2505_v31, %v1579_v23 }
 0x49a   :  { %v2507_v53 = vpop.eup %2506 }
 0x49b   :  { %v1592_v26 = vmul.f32 %v2507_v53, %v1365_v57  ;;  %vm1597_vm10 = vweird.f32 %v2507_v53  ;;  %v1584_v51 = vsel %vm1583_vm11, %v2505_v31, %v1580_v14 }
 0x49c   :  { %vm1598_vm13 = vmor %vm1596_vm12, %vm1597_vm10  ;;  %v1589_v37 = vsel %vm1586_vm14, %v1588_v42, %v1584_v51 }
 0x49d   :  { %v1593_v16 = vsub.f32 1.0, %v1592_v26 }
 0x49f   :  { %v1594_v46 = vmul.f32 %v2507_v53, %v1593_v16 }
 0x4a1   :  { %v1595_v33 = vadd.f32 %v2507_v53, %v1594_v46 }
 0x4a3   :  { %v1599_v7 = vsel %vm1598_vm13, %v2507_v53, %v1595_v33 }
 0x4a4   :  { %v1604_v34 = vsel %vm1601_vm15, %v1603_v12, %v1599_v7 }
 0x4a5   :  { %v1613_v38 = vpack.c.bf16 %v1604_v34, %v1589_v37 }
 0x4a7   :  { %1725 = vmatmul.bf16.gmra.mxu3 %v1613_v38 }
 0x4ba   :  { %v1691_v4 = vpop.f32.mrf.mxu3 }
 0x4bb   :  { %v1692_v28 = vadd.f32 %v3310_v5, %v1691_v4 }
 0x4bd   :  { %v2345_v39 = vmul.f32 -1.442695, %v1692_v28 }
 0x4bf   :  { %2508 = vpow2.f32 %v2345_v39 }
 0x4c2   :  { %v1693_v41 = vpop.f32.mrf.mxu3 }
 0x4c3   :  { %v1694_v47 = vadd.f32 %v3310_v5, %v1693_v41 }
 0x4c5   :  { %v2509_v54 = vpop.eup %2508  ;;  %v2346_v56 = vmul.f32 -1.442695, %v1694_v47 }
 0x4c6   :  { %v1779_v63 = vadd.f32 1.0, %v2509_v54 }
 0x4c7   :  { %2510 = vpow2.f32 %v2346_v56 }
 0x4c8   :  { %2512 = vrcp.f32 %v1779_v63  ;;  %v1806_v10 = vand.u32 2147483648, %v1779_v63  ;;  %v1804_v43 = vand.u32 2147483647, %v1779_v63  ;;  %vm1800_vm1 = vweird.f32 %v1779_v63 }
 0x4ca   :  { %v1696_v59 = vpop.f32.mrf.mxu3  ;;  %v1807_v17 = vor.u32 1.1754944e-38, %v1806_v10  ;;  %vm1805_vm3 = vcmp.eq.f32.partialorder %v1804_v43, 8.507059e+37 }
 0x4cb   :  { %v1697_v61 = vadd.f32 %v3310_v5, %v1696_v59 }
 0x4cd   :  { %v2511_v62 = vpop.eup %2510  ;;  %v2347_v0 = vmul.f32 -1.442695, %v1697_v61 }
 0x4ce   :  { %v2513_v45 = vpop.eup %2512  ;;  %v1780_v55 = vadd.f32 1.0, %v2511_v62 }
 0x4cf   :  { %v1796_v1 = vmul.f32 %v2513_v45, %v1779_v63  ;;  %2514 = vpow2.f32 %v2347_v0  ;;  %vm1801_vm0 = vweird.f32 %v2513_v45 }
 0x4d0   :  { %2516 = vrcp.f32 %v1780_v55  ;;  %vm1802_vm2 = vmor %vm1800_vm1, %vm1801_vm0  ;;  %v1821_v30 = vand.u32 2147483648, %v1780_v55  ;;  %v1819_v40 = vand.u32 2147483647, %v1780_v55  ;;  %vm1815_vm5 = vweird.f32 %v1780_v55 }
 0x4d1   :  { %v1797_v2 = vsub.f32 1.0, %v1796_v1 }
 0x4d2   :  { %v1698_v3 = vpop.f32.mrf.mxu3  ;;  %v1822_v27 = vor.u32 1.1754944e-38, %v1821_v30  ;;  %vm1820_vm7 = vcmp.eq.f32.partialorder %v1819_v40, 8.507059e+37 }
 0x4d3   :  { %v1798_v44 = vmul.f32 %v2513_v45, %v1797_v2  ;;  %v1699_v6 = vadd.f32 %v3310_v5, %v1698_v3 }
 0x4d5   :  { %v2515_v8 = vpop.eup %2514  ;;  %v1799_v60 = vadd.f32 %v2513_v45, %v1798_v44  ;;  %v2348_v11 = vmul.f32 -1.442695, %v1699_v6 }
 0x4d6   :  { %v2517_v25 = vpop.eup %2516  ;;  %v1781_v24 = vadd.f32 1.0, %v2515_v8 }
 0x4d7   :  { %v1803_v48 = vsel %vm1802_vm2, %v2513_v45, %v1799_v60  ;;  %v1811_v29 = vmul.f32 %v2517_v25, %v1780_v55  ;;  %2518 = vpow2.f32 %v2348_v11  ;;  %vm1816_vm4 = vweird.f32 %v2517_v25 }
 0x4d8   :  { %v1808_v13 = vsel %vm1805_vm3, %v1807_v17, %v1803_v48  ;;  %2520 = vrcp.f32 %v1781_v24  ;;  %vm1817_vm6 = vmor %vm1815_vm5, %vm1816_vm4  ;;  %v1836_v53 = vand.u32 2147483648, %v1781_v24  ;;  %v1834_v16 = vand.u32 2147483647, %v1781_v24 }
 0x4d9   :  { %2035 = vst [vmem:[#allocation13] sm:$0xff] %v1808_v13  ;;  %v1812_v9 = vsub.f32 1.0, %v1811_v29  ;;  %vm1830_vm9 = vweird.f32 %v1781_v24 }
 0x4da   :  { %v1701_v36 = vpop.f32.mrf.mxu3  ;;  %v1837_v51 = vor.u32 1.1754944e-38, %v1836_v53  ;;  %vm1835_vm11 = vcmp.eq.f32.partialorder %v1834_v16, 8.507059e+37 }
 0x4db   :  { %v1813_v19 = vmul.f32 %v2517_v25, %v1812_v9  ;;  %v1702_v31 = vadd.f32 %v3310_v5, %v1701_v36 }
 0x4dd   :  { %v2519_v57 = vpop.eup %2518  ;;  %v1814_v15 = vadd.f32 %v2517_v25, %v1813_v19  ;;  %v2349_v18 = vmul.f32 -1.442695, %v1702_v31 }
 0x4de   :  { %v2521_v49 = vpop.eup %2520  ;;  %v1782_v20 = vadd.f32 1.0, %v2519_v57 }
 0x4df   :  { %v1818_v50 = vsel %vm1817_vm6, %v2517_v25, %v1814_v15  ;;  %v1826_v21 = vmul.f32 %v2521_v49, %v1781_v24  ;;  %2522 = vpow2.f32 %v2349_v18  ;;  %vm1831_vm8 = vweird.f32 %v2521_v49 }
 0x4e0   :  { %v1823_v22 = vsel %vm1820_vm7, %v1822_v27, %v1818_v50  ;;  %2524 = vrcp.f32 %v1782_v20  ;;  %vm1832_vm10 = vmor %vm1830_vm9, %vm1831_vm8  ;;  %v1851_v34 = vand.u32 2147483648, %v1782_v20  ;;  %v1849_v28 = vand.u32 2147483647, %v1782_v20 }
 0x4e1   :  { %2036 = vst [vmem:[#allocation13 + $0x8] sm:$0xff] %v1823_v22  ;;  %v1827_v23 = vsub.f32 1.0, %v1826_v21  ;;  %vm1845_vm13 = vweird.f32 %v1782_v20 }
 0x4e2   :  { %v1703_v26 = vpop.f32.mrf.mxu3  ;;  %v1852_v63 = vor.u32 1.1754944e-38, %v1851_v34  ;;  %vm1850_vm15 = vcmp.eq.f32.partialorder %v1849_v28, 8.507059e+37 }
 0x4e3   :  { %v1828_v14 = vmul.f32 %v2521_v49, %v1827_v23  ;;  %v1704_v35 = vadd.f32 %v3310_v5, %v1703_v26 }
 0x4e5   :  { %v2523_v52 = vpop.eup %2522  ;;  %v1829_v58 = vadd.f32 %v2521_v49, %v1828_v14  ;;  %v2350_v46 = vmul.f32 -1.442695, %v1704_v35 }
 0x4e6   :  { %v2525_v32 = vpop.eup %2524  ;;  %v1783_v33 = vadd.f32 1.0, %v2523_v52 }
 0x4e7   :  { %v1833_v42 = vsel %vm1832_vm10, %v2521_v49, %v1829_v58  ;;  %v1841_v12 = vmul.f32 %v2525_v32, %v1782_v20  ;;  %2526 = vpow2.f32 %v2350_v46  ;;  %vm1846_vm12 = vweird.f32 %v2525_v32 }
 0x4e8   :  { %v1838_v7 = vsel %vm1835_vm11, %v1837_v51, %v1833_v42  ;;  %2528 = vrcp.f32 %v1783_v33  ;;  %vm1847_vm14 = vmor %vm1845_vm13, %vm1846_vm12  ;;  %v1866_v55 = vand.u32 2147483648, %v1783_v33  ;;  %v1864_v10 = vand.u32 2147483647, %v1783_v33 }
 0x4e9   :  { %2037 = vst [vmem:[#allocation13 + $0x10] sm:$0xff] %v1838_v7  ;;  %v1842_v37 = vsub.f32 1.0, %v1841_v12  ;;  %vm1860_vm1 = vweird.f32 %v1783_v33 }
 0x4ea   :  { %v1706_v38 = vpop.f32.mrf.mxu3  ;;  %v1867_v60 = vor.u32 1.1754944e-38, %v1866_v55  ;;  %vm1865_vm3 = vcmp.eq.f32.partialorder %v1864_v10, 8.507059e+37 }
 0x4eb   :  { %v1843_v4 = vmul.f32 %v2525_v32, %v1842_v37  ;;  %v1707_v39 = vadd.f32 %v3310_v5, %v1706_v38 }
 0x4ed   :  { %v2527_v41 = vpop.eup %2526  ;;  %v1844_v47 = vadd.f32 %v2525_v32, %v1843_v4  ;;  %v2351_v54 = vmul.f32 -1.442695, %v1707_v39 }
 0x4ee   :  { %v2529_v56 = vpop.eup %2528  ;;  %v1784_v59 = vadd.f32 1.0, %v2527_v41 }
 0x4ef   :  { %v1848_v61 = vsel %vm1847_vm14, %v2525_v32, %v1844_v47  ;;  %v1856_v62 = vmul.f32 %v2529_v56, %v1783_v33  ;;  %2530 = vpow2.f32 %v2351_v54  ;;  %vm1861_vm0 = vweird.f32 %v2529_v56 }
 0x4f0   :  { %v1853_v0 = vsel %vm1850_vm15, %v1852_v63, %v1848_v61  ;;  %2532 = vrcp.f32 %v1784_v59  ;;  %vm1862_vm2 = vmor %vm1860_vm1, %vm1861_vm0  ;;  %v1881_v29 = vand.u32 2147483648, %v1784_v59  ;;  %v1879_v30 = vand.u32 2147483647, %v1784_v59 }
 0x4f1   :  { %2038 = vst [vmem:[#allocation13 + $0x18] sm:$0xff] %v1853_v0  ;;  %v1857_v45 = vsub.f32 1.0, %v1856_v62  ;;  %vm1875_vm5 = vweird.f32 %v1784_v59 }
 0x4f2   :  { %v1708_v1 = vpop.f32.mrf.mxu3  ;;  %v1882_v15 = vor.u32 1.1754944e-38, %v1881_v29  ;;  %vm1880_vm7 = vcmp.eq.f32.partialorder %v1879_v30, 8.507059e+37 }
 0x4f3   :  { %v1858_v2 = vmul.f32 %v2529_v56, %v1857_v45  ;;  %v1709_v3 = vadd.f32 %v3310_v5, %v1708_v1 }
 0x4f5   :  { %v2531_v44 = vpop.eup %2530  ;;  %v1859_v43 = vadd.f32 %v2529_v56, %v1858_v2  ;;  %v2352_v6 = vmul.f32 -1.442695, %v1709_v3 }
 0x4f6   :  { %v2533_v8 = vpop.eup %2532  ;;  %v1785_v11 = vadd.f32 1.0, %v2531_v44 }
 0x4f7   :  { %v1863_v25 = vsel %vm1862_vm2, %v2529_v56, %v1859_v43  ;;  %v1871_v17 = vmul.f32 %v2533_v8, %v1784_v59  ;;  %2534 = vpow2.f32 %v2352_v6  ;;  %vm1876_vm4 = vweird.f32 %v2533_v8 }
 0x4f8   :  { %v1868_v24 = vsel %vm1865_vm3, %v1867_v60, %v1863_v25  ;;  %2536 = vrcp.f32 %v1785_v11  ;;  %vm1877_vm6 = vmor %vm1875_vm5, %vm1876_vm4  ;;  %v1896_v21 = vand.u32 2147483648, %v1785_v11  ;;  %v1894_v53 = vand.u32 2147483647, %v1785_v11 }
 0x4f9   :  { %2039 = vst [vmem:[#allocation13 + $0x20] sm:$0xff] %v1868_v24  ;;  %v1872_v48 = vsub.f32 1.0, %v1871_v17  ;;  %vm1890_vm9 = vweird.f32 %v1785_v11 }
 0x4fa   :  { %v1711_v13 = vpop.f32.mrf.mxu3  ;;  %v1897_v58 = vor.u32 1.1754944e-38, %v1896_v21  ;;  %vm1895_vm11 = vcmp.eq.f32.partialorder %v1894_v53, 8.507059e+37 }
 0x4fb   :  { %v1873_v9 = vmul.f32 %v2533_v8, %v1872_v48  ;;  %v1712_v36 = vadd.f32 %v3310_v5, %v1711_v13 }
 0x4fd   :  { %v2535_v19 = vpop.eup %2534  ;;  %v1874_v40 = vadd.f32 %v2533_v8, %v1873_v9  ;;  %v2353_v31 = vmul.f32 -1.442695, %v1712_v36 }
 0x4fe   :  { %v2537_v57 = vpop.eup %2536  ;;  %v1786_v18 = vadd.f32 1.0, %v2535_v19 }
 0x4ff   :  { %v1878_v49 = vsel %vm1877_vm6, %v2533_v8, %v1874_v40  ;;  %v1886_v27 = vmul.f32 %v2537_v57, %v1785_v11  ;;  %2538 = vpow2.f32 %v2353_v31  ;;  %vm1891_vm8 = vweird.f32 %v2537_v57 }
 0x500   :  { %v1883_v20 = vsel %vm1880_vm7, %v1882_v15, %v1878_v49  ;;  %2540 = vrcp.f32 %v1786_v18  ;;  %vm1892_vm10 = vmor %vm1890_vm9, %vm1891_vm8  ;;  %v1911_v12 = vand.u32 2147483648, %v1786_v18  ;;  %v1909_v34 = vand.u32 2147483647, %v1786_v18 }
 0x501   :  { %2040 = vst [vmem:[#allocation13 + $0x28] sm:$0xff] %v1883_v20  ;;  %v1887_v50 = vsub.f32 1.0, %v1886_v27  ;;  %vm1905_vm13 = vweird.f32 %v1786_v18 }
 0x502   :  { %v1713_v22 = vpop.f32.mrf.mxu3  ;;  %v1912_v47 = vor.u32 1.1754944e-38, %v1911_v12  ;;  %vm1910_vm15 = vcmp.eq.f32.partialorder %v1909_v34, 8.507059e+37 }
 0x503   :  { %v1888_v23 = vmul.f32 %v2537_v57, %v1887_v50  ;;  %v1714_v26 = vadd.f32 %v3310_v5, %v1713_v22 }
 0x505   :  { %v2539_v14 = vpop.eup %2538  ;;  %v1889_v16 = vadd.f32 %v2537_v57, %v1888_v23  ;;  %v2354_v35 = vmul.f32 -1.442695, %v1714_v26 }
 0x506   :  { %v2541_v52 = vpop.eup %2540  ;;  %v1787_v46 = vadd.f32 1.0, %v2539_v14 }
 0x507   :  { %v1893_v32 = vsel %vm1892_vm10, %v2537_v57, %v1889_v16  ;;  %v1901_v51 = vmul.f32 %v2541_v52, %v1786_v18  ;;  %2542 = vpow2.f32 %v2354_v35  ;;  %vm1906_vm12 = vweird.f32 %v2541_v52 }
 0x508   :  { %v1898_v33 = vsel %vm1895_vm11, %v1897_v58, %v1893_v32  ;;  %2544 = vrcp.f32 %v1787_v46  ;;  %vm1907_vm14 = vmor %vm1905_vm13, %vm1906_vm12  ;;  %v1926_v62 = vand.u32 2147483648, %v1787_v46  ;;  %v1924_v55 = vand.u32 2147483647, %v1787_v46 }
 0x509   :  { %2041 = vst [vmem:[#allocation13 + $0x30] sm:$0xff] %v1898_v33  ;;  %v1902_v42 = vsub.f32 1.0, %v1901_v51  ;;  %vm1920_vm1 = vweird.f32 %v1787_v46 }
 0x50a   :  { %v1716_v7 = vpop.f32.mrf.mxu3  ;;  %v1927_v43 = vor.u32 1.1754944e-38, %v1926_v62  ;;  %vm1925_vm3 = vcmp.eq.f32.partialorder %v1924_v55, 8.507059e+37 }
 0x50b   :  { %v1903_v37 = vmul.f32 %v2541_v52, %v1902_v42  ;;  %v1717_v38 = vadd.f32 %v3310_v5, %v1716_v7 }
 0x50d   :  { %v2543_v4 = vpop.eup %2542  ;;  %v1904_v28 = vadd.f32 %v2541_v52, %v1903_v37  ;;  %v2355_v39 = vmul.f32 -1.442695, %v1717_v38 }
 0x50e   :  { %v2545_v41 = vpop.eup %2544  ;;  %v1788_v54 = vadd.f32 1.0, %v2543_v4 }
 0x50f   :  { %v1908_v56 = vsel %vm1907_vm14, %v2541_v52, %v1904_v28  ;;  %v1916_v63 = vmul.f32 %v2545_v41, %v1787_v46  ;;  %2546 = vpow2.f32 %v2355_v39  ;;  %vm1921_vm0 = vweird.f32 %v2545_v41 }
 0x510   :  { %v1913_v59 = vsel %vm1910_vm15, %v1912_v47, %v1908_v56  ;;  %2548 = vrcp.f32 %v1788_v54  ;;  %vm1922_vm2 = vmor %vm1920_vm1, %vm1921_vm0  ;;  %v1941_v17 = vand.u32 2147483648, %v1788_v54  ;;  %v1939_v29 = vand.u32 2147483647, %v1788_v54 }
 0x511   :  { %2042 = vst [vmem:[#allocation13 + $0x38] sm:$0xff] %v1913_v59  ;;  %v1917_v61 = vsub.f32 1.0, %v1916_v63  ;;  %vm1935_vm5 = vweird.f32 %v1788_v54 }
 0x512   :  { %v1718_v0 = vpop.f32.mrf.mxu3  ;;  %v1942_v40 = vor.u32 1.1754944e-38, %v1941_v17  ;;  %vm1940_vm7 = vcmp.eq.f32.partialorder %v1939_v29, 8.507059e+37 }
 0x513   :  { %v1918_v45 = vmul.f32 %v2545_v41, %v1917_v61  ;;  %v1719_v1 = vadd.f32 %v3310_v5, %v1718_v0 }
 0x515   :  { %v2547_v2 = vpop.eup %2546  ;;  %v1919_v10 = vadd.f32 %v2545_v41, %v1918_v45  ;;  %v2356_v3 = vmul.f32 -1.442695, %v1719_v1 }
 0x516   :  { %v2549_v44 = vpop.eup %2548  ;;  %v1789_v6 = vadd.f32 1.0, %v2547_v2 }
 0x517   :  { %v1923_v8 = vsel %vm1922_vm2, %v2545_v41, %v1919_v10  ;;  %v1931_v60 = vmul.f32 %v2549_v44, %v1788_v54  ;;  %2550 = vpow2.f32 %v2356_v3  ;;  %vm1936_vm4 = vweird.f32 %v2549_v44 }
 0x518   :  { %v1928_v11 = vsel %vm1925_vm3, %v1927_v43, %v1923_v8  ;;  %2552 = vrcp.f32 %v1789_v6  ;;  %vm1937_vm6 = vmor %vm1935_vm5, %vm1936_vm4  ;;  %v1956_v27 = vand.u32 2147483648, %v1789_v6  ;;  %v1954_v21 = vand.u32 2147483647, %v1789_v6 }
 0x519   :  { %2043 = vst [vmem:[#allocation13 + $0x40] sm:$0xff] %v1928_v11  ;;  %v1932_v25 = vsub.f32 1.0, %v1931_v60  ;;  %vm1950_vm9 = vweird.f32 %v1789_v6 }
 0x51a   :  { %v1721_v24 = vpop.f32.mrf.mxu3  ;;  %v1957_v16 = vor.u32 1.1754944e-38, %v1956_v27  ;;  %vm1955_vm11 = vcmp.eq.f32.partialorder %v1954_v21, 8.507059e+37 }
 0x51b   :  { %v1933_v48 = vmul.f32 %v2549_v44, %v1932_v25  ;;  %v1722_v13 = vadd.f32 %v3310_v5, %v1721_v24 }
 0x51d   :  { %v2551_v9 = vpop.eup %2550  ;;  %v1934_v30 = vadd.f32 %v2549_v44, %v1933_v48  ;;  %v2357_v36 = vmul.f32 -1.442695, %v1722_v13 }
 0x51e   :  { %v2553_v19 = vpop.eup %2552  ;;  %v1790_v31 = vadd.f32 1.0, %v2551_v9 }
 0x51f   :  { %v1938_v57 = vsel %vm1937_vm6, %v2549_v44, %v1934_v30  ;;  %v1946_v15 = vmul.f32 %v2553_v19, %v1789_v6  ;;  %2554 = vpow2.f32 %v2357_v36  ;;  %vm1951_vm8 = vweird.f32 %v2553_v19 }
 0x520   :  { %v1943_v18 = vsel %vm1940_vm7, %v1942_v40, %v1938_v57  ;;  %2556 = vrcp.f32 %v1790_v31  ;;  %vm1952_vm10 = vmor %vm1950_vm9, %vm1951_vm8  ;;  %v1971_v51 = vand.u32 2147483648, %v1790_v31  ;;  %v1969_v12 = vand.u32 2147483647, %v1790_v31 }
 0x521   :  { %2044 = vst [vmem:[#allocation13 + $0x48] sm:$0xff] %v1943_v18  ;;  %v1947_v49 = vsub.f32 1.0, %v1946_v15  ;;  %vm1965_vm13 = vweird.f32 %v1790_v31 }
 0x522   :  { %v1723_v20 = vpop.f32.mrf.mxu3  ;;  %v1972_v28 = vor.u32 1.1754944e-38, %v1971_v51  ;;  %vm1970_vm15 = vcmp.eq.f32.partialorder %v1969_v12, 8.507059e+37 }
 0x523   :  { %v1948_v50 = vmul.f32 %v2553_v19, %v1947_v49  ;;  %v1724_v22 = vadd.f32 %v3310_v5, %v1723_v20 }
 0x525   :  { %v2555_v23 = vpop.eup %2554  ;;  %v1949_v53 = vadd.f32 %v2553_v19, %v1948_v50  ;;  %v2358_v26 = vmul.f32 -1.442695, %v1724_v22 }
 0x526   :  { %v2557_v14 = vpop.eup %2556  ;;  %v1791_v35 = vadd.f32 1.0, %v2555_v23 }
 0x527   :  { %v1953_v52 = vsel %vm1952_vm10, %v2553_v19, %v1949_v53  ;;  %v1961_v58 = vmul.f32 %v2557_v14, %v1790_v31  ;;  %2558 = vpow2.f32 %v2358_v26  ;;  %vm1966_vm12 = vweird.f32 %v2557_v14 }
 0x528   :  { %v1958_v46 = vsel %vm1955_vm11, %v1957_v16, %v1953_v52  ;;  %2560 = vrcp.f32 %v1791_v35  ;;  %vm1967_vm14 = vmor %vm1965_vm13, %vm1966_vm12  ;;  %v1986_v63 = vand.u32 2147483648, %v1791_v35  ;;  %v1984_v62 = vand.u32 2147483647, %v1791_v35 }
 0x529   :  { %2045 = vst [vmem:[#allocation13 + $0x50] sm:$0xff] %v1958_v46  ;;  %v1962_v32 = vsub.f32 1.0, %v1961_v58  ;;  %vm1980_vm1 = vweird.f32 %v1791_v35 }
 0x52a   :  { %v1726_v33 = vpop.f32.mrf.mxu3  ;;  %v1987_v10 = vor.u32 1.1754944e-38, %v1986_v63  ;;  %vm1985_vm3 = vcmp.eq.f32.partialorder %v1984_v62, 8.507059e+37 }
 0x52b   :  { %v1963_v42 = vmul.f32 %v2557_v14, %v1962_v32  ;;  %v1727_v7 = vadd.f32 %v3310_v5, %v1726_v33 }
 0x52d   :  { %v2559_v37 = vpop.eup %2558  ;;  %v1964_v34 = vadd.f32 %v2557_v14, %v1963_v42  ;;  %v2359_v38 = vmul.f32 -1.442695, %v1727_v7 }
 0x52e   :  { %v2561_v4 = vpop.eup %2560  ;;  %v1792_v39 = vadd.f32 1.0, %v2559_v37 }
 0x52f   :  { %v1968_v41 = vsel %vm1967_vm14, %v2557_v14, %v1964_v34  ;;  %v1976_v47 = vmul.f32 %v2561_v4, %v1791_v35  ;;  %2562 = vpow2.f32 %v2359_v38  ;;  %vm1981_vm0 = vweird.f32 %v2561_v4 }
 0x530   :  { %v1973_v54 = vsel %vm1970_vm15, %v1972_v28, %v1968_v41  ;;  %2564 = vrcp.f32 %v1792_v39  ;;  %vm1982_vm2 = vmor %vm1980_vm1, %vm1981_vm0  ;;  %v2001_v60 = vand.u32 2147483648, %v1792_v39  ;;  %vm1995_vm5 = vweird.f32 %v1792_v39 }
 0x531   :  { %2046 = vst [vmem:[#allocation13 + $0x58] sm:$0xff] %v1973_v54  ;;  %v1977_v56 = vsub.f32 1.0, %v1976_v47 }
 0x532   :  { %v1728_v59 = vpop.f32.mrf.mxu3  ;;  %v2002_v48 = vor.u32 1.1754944e-38, %v2001_v60 }
 0x533   :  { %v1978_v61 = vmul.f32 %v2561_v4, %v1977_v56  ;;  %v1729_v0 = vadd.f32 %v3310_v5, %v1728_v59  ;;  %v1999_v5 = vand.u32 2147483647, %v1792_v39 }
 0x535   :  { %v2563_v45 = vpop.eup %2562  ;;  %v1979_v55 = vadd.f32 %v2561_v4, %v1978_v61  ;;  %v2360_v1 = vmul.f32 -1.442695, %v1729_v0  ;;  %vm2000_vm7 = vcmp.eq.f32.partialorder %v1999_v5, 8.507059e+37 }
 0x536   :  { %v2565_v2 = vpop.eup %2564  ;;  %v1793_v3 = vadd.f32 1.0, %v2563_v45 }
 0x537   :  { %v1983_v44 = vsel %vm1982_vm2, %v2561_v4, %v1979_v55  ;;  %v1991_v43 = vmul.f32 %v2565_v2, %v1792_v39  ;;  %2566 = vpow2.f32 %v2360_v1  ;;  %vm1996_vm4 = vweird.f32 %v2565_v2 }
 0x538   :  { %v1988_v6 = vsel %vm1985_vm3, %v1987_v10, %v1983_v44  ;;  %2568 = vrcp.f32 %v1793_v3  ;;  %vm1997_vm6 = vmor %vm1995_vm5, %vm1996_vm4  ;;  %v2016_v19 = vand.u32 2147483648, %v1793_v3  ;;  %v2014_v31 = vand.u32 2147483647, %v1793_v3 }
 0x539   :  { %2047 = vst [vmem:[#allocation13 + $0x60] sm:$0xff] %v1988_v6  ;;  %v1992_v8 = vsub.f32 1.0, %v1991_v43  ;;  %vm2010_vm9 = vweird.f32 %v1793_v3 }
 0x53a   :  { %v2017_v18 = vor.u32 1.1754944e-38, %v2016_v19  ;;  %vm2015_vm11 = vcmp.eq.f32.partialorder %v2014_v31, 8.507059e+37 }
 0x53b   :  { %v1993_v11 = vmul.f32 %v2565_v2, %v1992_v8 }
 0x53d   :  { %v2567_v25 = vpop.eup %2566  ;;  %v1994_v17 = vadd.f32 %v2565_v2, %v1993_v11 }
 0x53e   :  { %v2569_v24 = vpop.eup %2568  ;;  %v1794_v29 = vadd.f32 1.0, %v2567_v25 }
 0x53f   :  { %v1998_v13 = vsel %vm1997_vm6, %v2565_v2, %v1994_v17  ;;  %v2006_v9 = vmul.f32 %v2569_v24, %v1793_v3  ;;  %vm2011_vm8 = vweird.f32 %v2569_v24 }
 0x540   :  { %v2003_v30 = vsel %vm2000_vm7, %v2002_v48, %v1998_v13  ;;  %2570 = vrcp.f32 %v1794_v29  ;;  %vm2012_vm10 = vmor %vm2010_vm9, %vm2011_vm8  ;;  %v2031_v21 = vand.u32 2147483648, %v1794_v29  ;;  %v2029_v23 = vand.u32 2147483647, %v1794_v29 }
 0x541   :  { %2048 = vst [vmem:[#allocation13 + $0x68] sm:$0xff] %v2003_v30  ;;  %v2007_v36 = vsub.f32 1.0, %v2006_v9  ;;  %vm2025_vm13 = vweird.f32 %v1794_v29 }
 0x542   :  { %v2032_v26 = vor.u32 1.1754944e-38, %v2031_v21  ;;  %vm2030_vm15 = vcmp.eq.f32.partialorder %v2029_v23, 8.507059e+37 }
 0x543   :  { %v2008_v40 = vmul.f32 %v2569_v24, %v2007_v36 }
 0x545   :  { %v2009_v57 = vadd.f32 %v2569_v24, %v2008_v40 }
 0x546   :  { %v2571_v15 = vpop.eup %2570 }
 0x547   :  { %v2013_v49 = vsel %vm2012_vm10, %v2569_v24, %v2009_v57  ;;  %v2021_v27 = vmul.f32 %v2571_v15, %v1794_v29  ;;  %vm2026_vm12 = vweird.f32 %v2571_v15 }
 0x548   :  { %v2018_v20 = vsel %vm2015_vm11, %v2017_v18, %v2013_v49  ;;  %vm2027_vm14 = vmor %vm2025_vm13, %vm2026_vm12 }
 0x549   :  { %2049 = vst [vmem:[#allocation13 + $0x70] sm:$0xff] %v2018_v20  ;;  %v2022_v50 = vsub.f32 1.0, %v2021_v27 }
 0x54b   :  { %v2023_v22 = vmul.f32 %v2571_v15, %v2022_v50 }
 0x54d   :  { %v2024_v53 = vadd.f32 %v2571_v15, %v2023_v22 }
 0x54f   :  { %v2028_v14 = vsel %vm2027_vm14, %v2571_v15, %v2024_v53 }
 0x550   :  { %v2033_v16 = vsel %vm2030_vm15, %v2032_v26, %v2028_v14 }
 0x551   :  { %2050 = vst [vmem:[#allocation13 + $0x78] sm:$0xff] %v2033_v16 }
 0x552   :  { %2063 = dma.vmem_to_hbm [thread:$0]  %s2056_s3, 2048, %s2058_s28, [#allocation4], %s2760_s29, %s2760_s29, %s2761_s6  }
 0x553   :  { %2748 = dma.done.wait [#allocation4], 2048  }
 0x554   :  { %2749 = vsyncadd [#allocation4], 4294965248 }
 0x555   :  { %2068 = vsyncpa [#allocation3], 1 }
 0x556   :  { %2069 = vsyncpa [#allocation6], 1 }
 0x557   :  { %2070 = vsyncpa [#allocation9], 1 }
 0x558   :  { %2071 = vsyncpa [#allocation12], 1 }
 0x559   :  { %2072 = vsyncpa [#allocation4], 1 }

</bundles_post_ra>
